<compile_context>
chip_gen: v7x
topology: tpu7x:2x2x1
jax: 0.10.0
libtpu: 0.0.40
codegen_flags: <defaults>
</compile_context>

<pallas_src>
import functools

import jax
import jax.numpy as jnp
from jax import lax
from jax.experimental import pallas as pl
from jax.experimental.pallas import tpu as pltpu

# ----------------------------- config (small, synthetic) -----------------------------
D_MODEL = 32
N_LAYER = 2
EXPAND = 2
D_INNER = EXPAND * D_MODEL                                   # 64
HEADDIM = 16
NHEADS = D_INNER // HEADDIM                                  # 4
D_STATE = 16
NGROUPS = 1
D_CONV = 4
EPS = 1e-5
CONV_DIM = D_INNER + 2 * NGROUPS * D_STATE                   # 96
D_IN_PROJ = 2 * D_INNER + 2 * NGROUPS * D_STATE + NHEADS     # 164

# packed in_proj column layout (lane-dense, 256 wide):
#   [ z : 0..d_inner | dt : d_inner..d_inner+nheads | 0 | x|B|C : 128..128+96 | 0 ]
IN_PACK = 256
XBC_OFF = 128        # vreg-aligned start of the conv slab
CONV_PACK = 128      # conv slab width (96 real channels + zero pad)
SMALL_ROWS = 8       # rows of the packed small-parameter slab


# ----------------------------- fused backbone kernel -----------------------------
def _backbone_kernel(h_ref, w_in_ref, conv_w_ref, small_ref, w_out_ref,
                     out_ref, y_ref, cpad_ref, *,
                     n_layer, n_seq, seqlen, d_model, d_inner, d_state,
                     nheads, headdim, d_conv, eps):
    f32 = jnp.float32
    bf16 = jnp.bfloat16
    BL = n_seq * seqlen

    # -------- trace-time constants, shared by all layers --------
    row_f = lax.broadcasted_iota(jnp.int32, (BL, BL), 0).astype(f32)
    col_f = lax.broadcasted_iota(jnp.int32, (BL, BL), 1).astype(f32)
    inv_len = 1.0 / float(seqlen)
    same_seq = jnp.floor(row_f * inv_len) == jnp.floor(col_f * inv_len)
    tril = (same_seq & (row_f >= col_f)).astype(f32)           # block-diag causal 0/1
    t_f = lax.broadcasted_iota(jnp.int32, (BL, 1), 0).astype(f32)
    t_in_seq = t_f - float(seqlen) * jnp.floor(t_f * inv_len)  # position within sequence
    tap_mask = [(t_in_seq >= float(s)).astype(f32) for s in range(d_conv)]

    def sigmoid(x):
        # exact sigmoid (review: approx reciprocal can break strict parity)
        return 1.0 / (1.0 + jnp.exp(-x))

    def silu(x):
        return x * sigmoid(x)

    def softplus(x):
        return jnp.log1p(jnp.exp(-jnp.abs(x))) + jnp.maximum(x, 0.0)

    def rmsnorm(x, w):
        var = jnp.mean(x * x, axis=-1, keepdims=True)
        return x * lax.rsqrt(var + eps) * w

    # zero the left halo of the conv staging buffer (rest is overwritten per layer)
    cpad_ref[0:d_conv - 1, :] = jnp.zeros((d_conv - 1, cpad_ref.shape[1]), f32)

    h = h_ref[...].astype(f32)                                  # (BL, d_model)
    res = jnp.zeros_like(h)                                     # residual (fp32)

    for l in range(n_layer):
        small = small_ref[l]                                    # (8, 128) f32
        norm_w = small[0:1, :d_model]
        gnorm_w = small[1:2, :d_inner]
        d_skip = small[2:3, :d_inner]                           # D expanded per channel
        conv_b = small[3:4, :]
        a_neg = small[4:5, :nheads]                             # -exp(A_log)
        dt_bias = small[5:6, :nheads]

        # ---- fused residual add + RMSNorm (prenorm) ----
        res = h + res
        normed = rmsnorm(res, norm_w)

        # ---- in_proj: single lane-dense 256-wide matmul (bf16 MXU, f32 acc) ----
        pin = jnp.dot(normed.astype(bf16), w_in_ref[l],
                      preferred_element_type=f32)               # (BL, 256)
        z = pin[:, 0:d_inner]
        dt_raw = pin[:, d_inner:d_inner + nheads]
        xbc = pin[:, XBC_OFF:]                                  # (BL, 128) [x|B|C|pad]

        # ---- causal depthwise conv1d + SiLU: staged sublane shifts, VPU only ----
        cpad_ref[d_conv - 1:, :] = xbc
        conv_w = conv_w_ref[l]                                  # (d_conv, 128) f32
        acc = conv_b + conv_w[d_conv - 1:d_conv, :] * xbc       # tap with shift 0
        for k in range(d_conv - 1):
            s = d_conv - 1 - k                                  # left shift of this tap
            acc = acc + (conv_w[k:k + 1, :] * tap_mask[s]) * cpad_ref[k:k + BL, :]
        xbc_c = silu(acc)
        x_c = xbc_c[:, 0:d_inner]
        b_mat = xbc_c[:, d_inner:d_inner + d_state]
        c_mat = xbc_c[:, d_inner + d_state:d_inner + 2 * d_state]

        # ---- SSD (single-chunk quadratic), cumsum-based segment decay ----
        dt_h = softplus(dt_raw + dt_bias)                       # (BL, nheads)
        h_pad = (-nheads) % 8
        dt_cs = dt_h if h_pad == 0 else jnp.concatenate(
            [dt_h, jnp.zeros((BL, h_pad), f32)], axis=-1)
        cum_t = jnp.dot(tril, dt_cs, preferred_element_type=f32)   # (BL, H'): per-seq cumsum
        cum_s = cum_t.T                                             # (H', BL)
        # gmat = C @ B^T, causal-masked once (transposed-rhs dot, no bf16 transpose)
        gmat = lax.dot_general(c_mat.astype(bf16), b_mat.astype(bf16),
                               dimension_numbers=(((1,), (1,)), ((), ())),
                               preferred_element_type=f32) * tril   # (BL, BL)

        for hh in range(nheads):
            lo = hh * headdim
            seg = (cum_t[:, hh:hh + 1] - cum_s[hh:hh + 1, :]) * tril   # (BL, BL) VPU
            w_h = jnp.exp(a_neg[:, hh:hh + 1] * seg) * gmat            # EUP + VPU
            xdt = dt_h[:, hh:hh + 1] * x_c[:, lo:lo + headdim]
            y_ref[:, lo:lo + headdim] = jnp.dot(
                w_h.astype(bf16), xdt.astype(bf16), preferred_element_type=f32)
        y = y_ref[...] + d_skip * x_c                            # D-skip applied once

        # ---- gated RMSNorm (norm_before_gate=False) + out_proj ----
        g = rmsnorm(y * silu(z), gnorm_w)
        h = jnp.dot(g.astype(bf16), w_out_ref[l],
                    preferred_element_type=f32)                  # (BL, d_model)

    # ---- final fused add + norm (layer_norm_fn, is_rms_norm=True, weight + bias) ----
    nf = small_ref[n_layer]
    xf = h + res
    out_ref[...] = rmsnorm(xf, nf[0:1, :d_model]) + nf[1:2, :d_model]


# ----------------------------- wrapper -----------------------------
def backbone_forward(hidden_states, packed, *, seqs_per_step=None):
    bsz, seqlen, d_model = hidden_states.shape
    if seqs_per_step is None:
        seqs_per_step = bsz             # fold whole batch into one grid step (v5e/v6e)
    assert bsz % seqs_per_step == 0
    n_steps = bsz // seqs_per_step      # set seqs_per_step = bsz // 2 on v7x (2 TCs)
    rows = seqs_per_step * seqlen

    x2d = hidden_states.reshape(bsz * seqlen, d_model)
    weight_args = (packed["w_in"], packed["conv_w"], packed["small"], packed["w_out"])

    kernel = functools.partial(
        _backbone_kernel, n_layer=N_LAYER, n_seq=seqs_per_step, seqlen=seqlen,
        d_model=d_model, d_inner=D_INNER, d_state=D_STATE, nheads=NHEADS,
        headdim=HEADDIM, d_conv=D_CONV, eps=EPS)

    out2d = pl.pallas_call(
        kernel,
        grid=(n_steps,),
        in_specs=[pl.BlockSpec((rows, d_model), lambda i: (i, 0))]
                 + [pl.BlockSpec(w.shape, lambda i, _n=len(w.shape): (0,) * _n)
                    for w in weight_args],
        out_specs=pl.BlockSpec((rows, d_model), lambda i: (i, 0)),
        out_shape=jax.ShapeDtypeStruct((bsz * seqlen, d_model), jnp.float32),
        scratch_shapes=[pltpu.VMEM((rows, D_INNER), jnp.float32),
                        pltpu.VMEM((rows + D_CONV - 1, CONV_PACK), jnp.float32)],
        compiler_params=pltpu.CompilerParams(dimension_semantics=("parallel",)),
    )(x2d, *weight_args)
    return out2d.reshape(bsz, seqlen, d_model)


# ----------------------------- deterministic synthetic params -----------------------------
def init_params(key):
    layers = []
    for i in range(N_LAYER):
        k = jax.random.split(jax.random.fold_in(key, i), 6)
        layers.append(dict(
            norm_w=jnp.ones((D_MODEL,), jnp.float32),
            # nn.Linear weight stored pre-transposed as (in, out); no bias (Mamba2 default)
            in_proj_w=0.05 * jax.random.normal(k[0], (D_MODEL, D_IN_PROJ), jnp.float32),
            # PyTorch conv1d weight (C, 1, K) stored as (1, K, C)
            conv_w=0.2 * jax.random.normal(k[1], (1, D_CONV, CONV_DIM), jnp.float32),
            conv_b=0.01 * jax.random.normal(k[2], (1, 1, CONV_DIM), jnp.float32),
            dt_bias=jax.random.uniform(k[3], (NHEADS,), jnp.float32, -2.0, 0.0),
            A_log=jnp.log(jax.random.uniform(k[4], (NHEADS,), jnp.float32, 1.0, 8.0)),
            D=jnp.ones((NHEADS,), jnp.float32),
            norm_gated_w=jnp.ones((D_INNER,), jnp.float32),
            out_proj_w=0.05 * jax.random.normal(k[5], (D_INNER, D_MODEL), jnp.float32),
        ))
    final = dict(norm_f_w=jnp.ones((D_MODEL,), jnp.float32),
                 norm_f_b=jnp.zeros((D_MODEL,), jnp.float32))
    return layers, final


def pack_params(layer_params, final_params):
    """Repack per-layer params into lane-dense, layer-stacked kernel slabs."""
    n_layer = len(layer_params)
    w_in = jnp.zeros((n_layer, D_MODEL, IN_PACK), jnp.float32)
    conv_w = jnp.zeros((n_layer, D_CONV, CONV_PACK), jnp.float32)
    small = jnp.zeros((n_layer + 1, SMALL_ROWS, CONV_PACK), jnp.float32)
    w_out = jnp.zeros((n_layer, D_INNER, D_MODEL), jnp.float32)

    o_x = D_INNER
    o_dt = 2 * D_INNER + 2 * NGROUPS * D_STATE
    for l, p in enumerate(layer_params):
        W = p["in_proj_w"]                                   # original [z | x | B | C | dt]
        w_in = w_in.at[l, :, 0:D_INNER].set(W[:, 0:o_x])                       # z
        w_in = w_in.at[l, :, D_INNER:D_INNER + NHEADS].set(W[:, o_dt:])        # dt
        w_in = w_in.at[l, :, XBC_OFF:XBC_OFF + CONV_DIM].set(W[:, o_x:o_dt])   # [x|B|C]
        conv_w = conv_w.at[l, :, 0:CONV_DIM].set(p["conv_w"][0])
        small = small.at[l, 0, 0:D_MODEL].set(p["norm_w"])
        small = small.at[l, 1, 0:D_INNER].set(p["norm_gated_w"])
        small = small.at[l, 2, 0:D_INNER].set(jnp.repeat(p["D"], HEADDIM))     # D per channel
        small = small.at[l, 3, 0:CONV_DIM].set(p["conv_b"][0, 0])
        small = small.at[l, 4, 0:NHEADS].set(-jnp.exp(p["A_log"]))
        small = small.at[l, 5, 0:NHEADS].set(p["dt_bias"])
        w_out = w_out.at[l].set(p["out_proj_w"])
    small = small.at[n_layer, 0, 0:D_MODEL].set(final_params["norm_f_w"])
    small = small.at[n_layer, 1, 0:D_MODEL].set(final_params["norm_f_b"])
    return {"w_in": w_in.astype(jnp.bfloat16),      # bf16 MXU operands
            "conv_w": conv_w,                       # f32 (VPU conv)
            "small": small,                         # f32 elementwise params
            "w_out": w_out.astype(jnp.bfloat16)}


if __name__ == "__main__":
    key = jax.random.PRNGKey(0)
    pkey, xkey = jax.random.split(key)
    layer_params, final_params = init_params(pkey)
    packed = pack_params(layer_params, final_params)

    # (batch=2, seq=8, d_model=32)
    hidden_states = jax.random.normal(xkey, (2, 8, D_MODEL), jnp.float32)

    out = jax.jit(backbone_forward)(hidden_states, packed)
    out = jax.block_until_ready(out)

    assert out.shape == (2, 8, D_MODEL)
    assert bool(jnp.all(jnp.isfinite(out)))
    print("KERNEL_OK")
</pallas_src>

<mosaic_0001>
module attributes {stable_mosaic.version = 11 : i64} {
  func.func @_backbone_kernel(%arg0: i32, %arg1: memref<16x32xf32, #tpu.memory_space<vmem>>, %arg2: memref<2x32x256xbf16, #tpu.memory_space<vmem>>, %arg3: memref<2x4x128xf32, #tpu.memory_space<vmem>>, %arg4: memref<3x8x128xf32, #tpu.memory_space<vmem>>, %arg5: memref<2x64x32xbf16, #tpu.memory_space<vmem>>, %arg6: memref<16x32xf32, #tpu.memory_space<vmem>>, %arg7: memref<16x64xf32, #tpu.memory_space<vmem>>, %arg8: memref<19x128xf32, #tpu.memory_space<vmem>>) attributes {dimension_semantics = [#tpu.dimension_semantics<parallel>], iteration_bounds = array<i64: 1>, scalar_prefetch = 0 : i64, scratch_operands = 2 : i64, tpu.core_type = #tpu.core_type<tc>, window_params = [{transform_indices = @transform_0, window_bounds = array<i64: 16, 32>}, {pipeline_mode = #tpu.pipeline_mode<synchronous>, transform_indices = @transform_1, window_bounds = array<i64: 2, 32, 256>}, {pipeline_mode = #tpu.pipeline_mode<synchronous>, transform_indices = @transform_2, window_bounds = array<i64: 2, 4, 128>}, {pipeline_mode = #tpu.pipeline_mode<synchronous>, transform_indices = @transform_3, window_bounds = array<i64: 3, 8, 128>}, {pipeline_mode = #tpu.pipeline_mode<synchronous>, transform_indices = @transform_4, window_bounds = array<i64: 2, 64, 32>}, {transform_indices = @transform_5, window_bounds = array<i64: 16, 32>}]} {
    %0 = tpu.iota {dimensions = array<i32: 0>} : vector<16x16xi32>
    %1 = arith.sitofp %0 : vector<16x16xi32> to vector<16x16xf32>
    %2 = tpu.iota {dimensions = array<i32: 1>} : vector<16x16xi32>
    %3 = arith.sitofp %2 : vector<16x16xi32> to vector<16x16xf32>
    %cst = arith.constant 1.250000e-01 : f32
    %4 = vector.broadcast %cst : f32 to vector<16x16xf32>
    %5 = arith.mulf %1, %4 : vector<16x16xf32>
    %6 = math.floor %5 : vector<16x16xf32>
    %cst_0 = arith.constant 1.250000e-01 : f32
    %7 = vector.broadcast %cst_0 : f32 to vector<16x16xf32>
    %8 = arith.mulf %3, %7 : vector<16x16xf32>
    %9 = math.floor %8 : vector<16x16xf32>
    %10 = arith.cmpf oeq, %6, %9 : vector<16x16xf32>
    %11 = arith.cmpf oge, %1, %3 : vector<16x16xf32>
    %12 = arith.andi %10, %11 : vector<16x16xi1>
    %13 = arith.extui %12 : vector<16x16xi1> to vector<16x16xi32>
    %14 = arith.sitofp %13 : vector<16x16xi32> to vector<16x16xf32>
    %15 = tpu.iota {dimensions = array<i32: 0>} : vector<16x1xi32>
    %16 = arith.sitofp %15 : vector<16x1xi32> to vector<16x1xf32>
    %cst_1 = arith.constant 1.250000e-01 : f32
    %17 = vector.broadcast %cst_1 : f32 to vector<16x1xf32>
    %18 = arith.mulf %16, %17 : vector<16x1xf32>
    %19 = math.floor %18 : vector<16x1xf32>
    %cst_2 = arith.constant 8.000000e+00 : f32
    %20 = vector.broadcast %cst_2 : f32 to vector<16x1xf32>
    %21 = arith.mulf %20, %19 : vector<16x1xf32>
    %22 = arith.subf %16, %21 : vector<16x1xf32>
    %cst_3 = arith.constant 1.000000e+00 : f32
    %23 = vector.broadcast %cst_3 : f32 to vector<16x1xf32>
    %24 = arith.cmpf oge, %22, %23 : vector<16x1xf32>
    %25 = arith.extui %24 : vector<16x1xi1> to vector<16x1xi32>
    %26 = arith.sitofp %25 : vector<16x1xi32> to vector<16x1xf32>
    %cst_4 = arith.constant 2.000000e+00 : f32
    %27 = vector.broadcast %cst_4 : f32 to vector<16x1xf32>
    %28 = arith.cmpf oge, %22, %27 : vector<16x1xf32>
    %29 = arith.extui %28 : vector<16x1xi1> to vector<16x1xi32>
    %30 = arith.sitofp %29 : vector<16x1xi32> to vector<16x1xf32>
    %cst_5 = arith.constant 3.000000e+00 : f32
    %31 = vector.broadcast %cst_5 : f32 to vector<16x1xf32>
    %32 = arith.cmpf oge, %22, %31 : vector<16x1xf32>
    %33 = arith.extui %32 : vector<16x1xi1> to vector<16x1xi32>
    %34 = arith.sitofp %33 : vector<16x1xi32> to vector<16x1xf32>
    %cst_6 = arith.constant 0.000000e+00 : f32
    %35 = vector.broadcast %cst_6 : f32 to vector<3x128xf32>
    %c0 = arith.constant 0 : index
    %c0_7 = arith.constant 0 : index
    %36 = vector.load %arg8[%c0, %c0_7] : memref<19x128xf32, #tpu.memory_space<vmem>>, vector<3x128xf32>
    tpu.vector_store %arg8[%c0, %c0_7], %35 {strides = array<i32>} : memref<19x128xf32, #tpu.memory_space<vmem>>, vector<3x128xf32>,
    %c0_8 = arith.constant 0 : index
    %c0_9 = arith.constant 0 : index
    %37 = vector.load %arg1[%c0_8, %c0_9] : memref<16x32xf32, #tpu.memory_space<vmem>>, vector<16x32xf32>
    %cst_10 = arith.constant 0.000000e+00 : f32
    %38 = vector.broadcast %cst_10 : f32 to vector<16x32xf32>
    %c0_11 = arith.constant 0 : index
    %c0_12 = arith.constant 0 : index
    %c0_13 = arith.constant 0 : index
    %39 = vector.load %arg4[%c0_11, %c0_12, %c0_13] : memref<3x8x128xf32, #tpu.memory_space<vmem>>, vector<1x8x128xf32>
    %40 = vector.shape_cast %39 : vector<1x8x128xf32> to vector<8x128xf32>
    %41 = vector.extract_strided_slice %40 {offsets = [0, 0], sizes = [1, 32], strides = [1, 1]} : vector<8x128xf32> to vector<1x32xf32>
    %42 = vector.extract_strided_slice %40 {offsets = [1, 0], sizes = [1, 64], strides = [1, 1]} : vector<8x128xf32> to vector<1x64xf32>
    %43 = vector.extract_strided_slice %40 {offsets = [2, 0], sizes = [1, 64], strides = [1, 1]} : vector<8x128xf32> to vector<1x64xf32>
    %44 = vector.extract_strided_slice %40 {offsets = [3, 0], sizes = [1, 128], strides = [1, 1]} : vector<8x128xf32> to vector<1x128xf32>
    %45 = vector.extract_strided_slice %40 {offsets = [4, 0], sizes = [1, 4], strides = [1, 1]} : vector<8x128xf32> to vector<1x4xf32>
    %46 = vector.extract_strided_slice %40 {offsets = [5, 0], sizes = [1, 4], strides = [1, 1]} : vector<8x128xf32> to vector<1x4xf32>
    %47 = arith.addf %37, %38 : vector<16x32xf32>
    %48 = arith.mulf %47, %47 : vector<16x32xf32>
    %cst_14 = arith.constant dense<0.000000e+00> : vector<16xf32>
    %49 = vector.multi_reduction <add>, %48, %cst_14 [1] : vector<16x32xf32> to vector<16xf32>
    %50 = vector.shape_cast %49 : vector<16xf32> to vector<16x1xf32>
    %cst_15 = arith.constant 3.200000e+01 : f32
    %51 = vector.broadcast %cst_15 : f32 to vector<16x1xf32>
    %52 = arith.divf %50, %51 : vector<16x1xf32>
    %cst_16 = arith.constant 9.99999974E-6 : f32
    %53 = vector.broadcast %cst_16 : f32 to vector<16x1xf32>
    %54 = arith.addf %52, %53 : vector<16x1xf32>
    %55 = math.rsqrt %54 : vector<16x1xf32>
    %56 = vector.broadcast %55 : vector<16x1xf32> to vector<16x32xf32>
    %57 = arith.mulf %47, %56 : vector<16x32xf32>
    %58 = vector.broadcast %41 : vector<1x32xf32> to vector<16x32xf32>
    %59 = arith.mulf %57, %58 : vector<16x32xf32>
    %60 = arith.truncf %59 : vector<16x32xf32> to vector<16x32xbf16>
    %c0_17 = arith.constant 0 : index
    %c0_18 = arith.constant 0 : index
    %c0_19 = arith.constant 0 : index
    %61 = vector.load %arg2[%c0_17, %c0_18, %c0_19] : memref<2x32x256xbf16, #tpu.memory_space<vmem>>, vector<1x32x256xbf16>
    %62 = vector.shape_cast %61 : vector<1x32x256xbf16> to vector<32x256xbf16>
    %cst_20 = arith.constant dense<0.000000e+00> : vector<16x256xf32>
    %63 = tpu.matmul %60, %62, %cst_20 {dimension_numbers = #tpu.dot_dimension_numbers<[1], [0], [0], [1], [0, 0, 1, 1], [], []>} : vector<16x32xbf16>, vector<32x256xbf16>, vector<16x256xf32> -> vector<16x256xf32>
    %64 = vector.extract_strided_slice %63 {offsets = [0, 0], sizes = [16, 64], strides = [1, 1]} : vector<16x256xf32> to vector<16x64xf32>
    %65 = vector.extract_strided_slice %63 {offsets = [0, 64], sizes = [16, 4], strides = [1, 1]} : vector<16x256xf32> to vector<16x4xf32>
    %66 = vector.extract_strided_slice %63 {offsets = [0, 128], sizes = [16, 128], strides = [1, 1]} : vector<16x256xf32> to vector<16x128xf32>
    %c3 = arith.constant 3 : index
    %c0_21 = arith.constant 0 : index
    %67 = vector.load %arg8[%c3, %c0_21] : memref<19x128xf32, #tpu.memory_space<vmem>>, vector<16x128xf32>
    tpu.vector_store %arg8[%c3, %c0_21], %66 {strides = array<i32>} : memref<19x128xf32, #tpu.memory_space<vmem>>, vector<16x128xf32>,
    %c0_22 = arith.constant 0 : index
    %c0_23 = arith.constant 0 : index
    %c0_24 = arith.constant 0 : index
    %68 = vector.load %arg3[%c0_22, %c0_23, %c0_24] : memref<2x4x128xf32, #tpu.memory_space<vmem>>, vector<1x4x128xf32>
    %69 = vector.shape_cast %68 : vector<1x4x128xf32> to vector<4x128xf32>
    %70 = vector.extract_strided_slice %69 {offsets = [3, 0], sizes = [1, 128], strides = [1, 1]} : vector<4x128xf32> to vector<1x128xf32>
    %71 = vector.broadcast %70 : vector<1x128xf32> to vector<16x128xf32>
    %72 = arith.mulf %71, %66 : vector<16x128xf32>
    %73 = vector.broadcast %44 : vector<1x128xf32> to vector<16x128xf32>
    %74 = arith.addf %73, %72 : vector<16x128xf32>
    %75 = vector.extract_strided_slice %69 {offsets = [0, 0], sizes = [1, 128], strides = [1, 1]} : vector<4x128xf32> to vector<1x128xf32>
    %76 = vector.broadcast %75 : vector<1x128xf32> to vector<16x128xf32>
    %77 = vector.broadcast %34 : vector<16x1xf32> to vector<16x128xf32>
    %78 = arith.mulf %76, %77 : vector<16x128xf32>
    %c0_25 = arith.constant 0 : index
    %c0_26 = arith.constant 0 : index
    %79 = vector.load %arg8[%c0_25, %c0_26] : memref<19x128xf32, #tpu.memory_space<vmem>>, vector<16x128xf32>
    %80 = arith.mulf %78, %79 : vector<16x128xf32>
    %81 = arith.addf %74, %80 : vector<16x128xf32>
    %82 = vector.extract_strided_slice %69 {offsets = [1, 0], sizes = [1, 128], strides = [1, 1]} : vector<4x128xf32> to vector<1x128xf32>
    %83 = vector.broadcast %82 : vector<1x128xf32> to vector<16x128xf32>
    %84 = vector.broadcast %30 : vector<16x1xf32> to vector<16x128xf32>
    %85 = arith.mulf %83, %84 : vector<16x128xf32>
    %c1 = arith.constant 1 : index
    %c0_27 = arith.constant 0 : index
    %86 = vector.load %arg8[%c1, %c0_27] : memref<19x128xf32, #tpu.memory_space<vmem>>, vector<16x128xf32>
    %87 = arith.mulf %85, %86 : vector<16x128xf32>
    %88 = arith.addf %81, %87 : vector<16x128xf32>
    %89 = vector.extract_strided_slice %69 {offsets = [2, 0], sizes = [1, 128], strides = [1, 1]} : vector<4x128xf32> to vector<1x128xf32>
    %90 = vector.broadcast %89 : vector<1x128xf32> to vector<16x128xf32>
    %91 = vector.broadcast %26 : vector<16x1xf32> to vector<16x128xf32>
    %92 = arith.mulf %90, %91 : vector<16x128xf32>
    %c2 = arith.constant 2 : index
    %c0_28 = arith.constant 0 : index
    %93 = vector.load %arg8[%c2, %c0_28] : memref<19x128xf32, #tpu.memory_space<vmem>>, vector<16x128xf32>
    %94 = arith.mulf %92, %93 : vector<16x128xf32>
    %95 = arith.addf %88, %94 : vector<16x128xf32>
    %cst_29 = arith.constant 0.000000e+00 : f32
    %96 = vector.broadcast %cst_29 : f32 to vector<16x128xf32>
    %97 = arith.subf %96, %95 : vector<16x128xf32>
    %98 = math.exp %97 : vector<16x128xf32>
    %cst_30 = arith.constant 1.000000e+00 : f32
    %99 = vector.broadcast %cst_30 : f32 to vector<16x128xf32>
    %100 = arith.addf %99, %98 : vector<16x128xf32>
    %cst_31 = arith.constant 1.000000e+00 : f32
    %101 = vector.broadcast %cst_31 : f32 to vector<16x128xf32>
    %102 = arith.divf %101, %100 : vector<16x128xf32>
    %103 = arith.mulf %95, %102 : vector<16x128xf32>
    %104 = vector.extract_strided_slice %103 {offsets = [0, 0], sizes = [16, 64], strides = [1, 1]} : vector<16x128xf32> to vector<16x64xf32>
    %105 = vector.extract_strided_slice %103 {offsets = [0, 64], sizes = [16, 16], strides = [1, 1]} : vector<16x128xf32> to vector<16x16xf32>
    %106 = vector.extract_strided_slice %103 {offsets = [0, 80], sizes = [16, 16], strides = [1, 1]} : vector<16x128xf32> to vector<16x16xf32>
    %107 = vector.broadcast %46 : vector<1x4xf32> to vector<16x4xf32>
    %108 = arith.addf %65, %107 : vector<16x4xf32>
    %109 = math.absf %108 : vector<16x4xf32>
    %cst_32 = arith.constant 0.000000e+00 : f32
    %110 = vector.broadcast %cst_32 : f32 to vector<16x4xf32>
    %111 = arith.subf %110, %109 : vector<16x4xf32>
    %112 = math.exp %111 : vector<16x4xf32>
    %113 = math.log1p %112 : vector<16x4xf32>
    %cst_33 = arith.constant 0.000000e+00 : f32
    %114 = vector.broadcast %cst_33 : f32 to vector<16x4xf32>
    %115 = arith.maximumf %108, %114 : vector<16x4xf32>
    %116 = arith.addf %113, %115 : vector<16x4xf32>
    %cst_34 = arith.constant 0.000000e+00 : f32
    %117 = vector.broadcast %cst_34 : f32 to vector<16x4xf32>
    %118 = tpu.concatenate %116, %117 in 1 : vector<16x4xf32>, vector<16x4xf32> -> vector<16x8xf32>
    %cst_35 = arith.constant dense<0.000000e+00> : vector<16x8xf32>
    %119 = tpu.matmul %14, %118, %cst_35 {dimension_numbers = #tpu.dot_dimension_numbers<[1], [0], [0], [1], [0, 0, 1, 1], [], []>} : vector<16x16xf32>, vector<16x8xf32>, vector<16x8xf32> -> vector<16x8xf32>
    %120 = tpu.transpose %119, [1, 0] : vector<16x8xf32> -> vector<8x16xf32>
    %121 = arith.truncf %106 : vector<16x16xf32> to vector<16x16xbf16>
    %122 = arith.truncf %105 : vector<16x16xf32> to vector<16x16xbf16>
    %cst_36 = arith.constant dense<0.000000e+00> : vector<16x16xf32>
    %123 = tpu.matmul %121, %122, %cst_36 {dimension_numbers = #tpu.dot_dimension_numbers<[1], [1], [0], [0], [0, 0, 1, 0], [], []>} : vector<16x16xbf16>, vector<16x16xbf16>, vector<16x16xf32> -> vector<16x16xf32>
    %124 = arith.mulf %123, %14 : vector<16x16xf32>
    %125 = vector.extract_strided_slice %119 {offsets = [0, 0], sizes = [16, 1], strides = [1, 1]} : vector<16x8xf32> to vector<16x1xf32>
    %126 = vector.extract_strided_slice %120 {offsets = [0, 0], sizes = [1, 16], strides = [1, 1]} : vector<8x16xf32> to vector<1x16xf32>
    %127 = vector.broadcast %125 : vector<16x1xf32> to vector<16x16xf32>
    %128 = vector.broadcast %126 : vector<1x16xf32> to vector<16x16xf32>
    %129 = arith.subf %127, %128 : vector<16x16xf32>
    %130 = arith.mulf %129, %14 : vector<16x16xf32>
    %131 = vector.extract_strided_slice %45 {offsets = [0, 0], sizes = [1, 1], strides = [1, 1]} : vector<1x4xf32> to vector<1x1xf32>
    %132 = vector.broadcast %131 : vector<1x1xf32> to vector<16x16xf32>
    %133 = arith.mulf %132, %130 : vector<16x16xf32>
    %134 = math.exp %133 : vector<16x16xf32>
    %135 = arith.mulf %134, %124 : vector<16x16xf32>
    %136 = vector.extract_strided_slice %116 {offsets = [0, 0], sizes = [16, 1], strides = [1, 1]} : vector<16x4xf32> to vector<16x1xf32>
    %137 = vector.extract_strided_slice %104 {offsets = [0, 0], sizes = [16, 16], strides = [1, 1]} : vector<16x64xf32> to vector<16x16xf32>
    %138 = vector.broadcast %136 : vector<16x1xf32> to vector<16x16xf32>
    %139 = arith.mulf %138, %137 : vector<16x16xf32>
    %140 = arith.truncf %135 : vector<16x16xf32> to vector<16x16xbf16>
    %141 = arith.truncf %139 : vector<16x16xf32> to vector<16x16xbf16>
    %cst_37 = arith.constant dense<0.000000e+00> : vector<16x16xf32>
    %142 = tpu.matmul %140, %141, %cst_37 {dimension_numbers = #tpu.dot_dimension_numbers<[1], [0], [0], [1], [0, 0, 1, 1], [], []>} : vector<16x16xbf16>, vector<16x16xbf16>, vector<16x16xf32> -> vector<16x16xf32>
    %c0_38 = arith.constant 0 : index
    %c0_39 = arith.constant 0 : index
    %143 = vector.load %arg7[%c0_38, %c0_39] : memref<16x64xf32, #tpu.memory_space<vmem>>, vector<16x16xf32>
    tpu.vector_store %arg7[%c0_38, %c0_39], %142 {strides = array<i32>} : memref<16x64xf32, #tpu.memory_space<vmem>>, vector<16x16xf32>,
    %144 = vector.extract_strided_slice %119 {offsets = [0, 1], sizes = [16, 1], strides = [1, 1]} : vector<16x8xf32> to vector<16x1xf32>
    %145 = vector.extract_strided_slice %120 {offsets = [1, 0], sizes = [1, 16], strides = [1, 1]} : vector<8x16xf32> to vector<1x16xf32>
    %146 = vector.broadcast %144 : vector<16x1xf32> to vector<16x16xf32>
    %147 = vector.broadcast %145 : vector<1x16xf32> to vector<16x16xf32>
    %148 = arith.subf %146, %147 : vector<16x16xf32>
    %149 = arith.mulf %148, %14 : vector<16x16xf32>
    %150 = vector.extract_strided_slice %45 {offsets = [0, 1], sizes = [1, 1], strides = [1, 1]} : vector<1x4xf32> to vector<1x1xf32>
    %151 = vector.broadcast %150 : vector<1x1xf32> to vector<16x16xf32>
    %152 = arith.mulf %151, %149 : vector<16x16xf32>
    %153 = math.exp %152 : vector<16x16xf32>
    %154 = arith.mulf %153, %124 : vector<16x16xf32>
    %155 = vector.extract_strided_slice %116 {offsets = [0, 1], sizes = [16, 1], strides = [1, 1]} : vector<16x4xf32> to vector<16x1xf32>
    %156 = vector.extract_strided_slice %104 {offsets = [0, 16], sizes = [16, 16], strides = [1, 1]} : vector<16x64xf32> to vector<16x16xf32>
    %157 = vector.broadcast %155 : vector<16x1xf32> to vector<16x16xf32>
    %158 = arith.mulf %157, %156 : vector<16x16xf32>
    %159 = arith.truncf %154 : vector<16x16xf32> to vector<16x16xbf16>
    %160 = arith.truncf %158 : vector<16x16xf32> to vector<16x16xbf16>
    %cst_40 = arith.constant dense<0.000000e+00> : vector<16x16xf32>
    %161 = tpu.matmul %159, %160, %cst_40 {dimension_numbers = #tpu.dot_dimension_numbers<[1], [0], [0], [1], [0, 0, 1, 1], [], []>} : vector<16x16xbf16>, vector<16x16xbf16>, vector<16x16xf32> -> vector<16x16xf32>
    %c0_41 = arith.constant 0 : index
    %c16 = arith.constant 16 : index
    %162 = vector.load %arg7[%c0_41, %c16] : memref<16x64xf32, #tpu.memory_space<vmem>>, vector<16x16xf32>
    tpu.vector_store %arg7[%c0_41, %c16], %161 {strides = array<i32>} : memref<16x64xf32, #tpu.memory_space<vmem>>, vector<16x16xf32>,
    %163 = vector.extract_strided_slice %119 {offsets = [0, 2], sizes = [16, 1], strides = [1, 1]} : vector<16x8xf32> to vector<16x1xf32>
    %164 = vector.extract_strided_slice %120 {offsets = [2, 0], sizes = [1, 16], strides = [1, 1]} : vector<8x16xf32> to vector<1x16xf32>
    %165 = vector.broadcast %163 : vector<16x1xf32> to vector<16x16xf32>
    %166 = vector.broadcast %164 : vector<1x16xf32> to vector<16x16xf32>
    %167 = arith.subf %165, %166 : vector<16x16xf32>
    %168 = arith.mulf %167, %14 : vector<16x16xf32>
    %169 = vector.extract_strided_slice %45 {offsets = [0, 2], sizes = [1, 1], strides = [1, 1]} : vector<1x4xf32> to vector<1x1xf32>
    %170 = vector.broadcast %169 : vector<1x1xf32> to vector<16x16xf32>
    %171 = arith.mulf %170, %168 : vector<16x16xf32>
    %172 = math.exp %171 : vector<16x16xf32>
    %173 = arith.mulf %172, %124 : vector<16x16xf32>
    %174 = vector.extract_strided_slice %116 {offsets = [0, 2], sizes = [16, 1], strides = [1, 1]} : vector<16x4xf32> to vector<16x1xf32>
    %175 = vector.extract_strided_slice %104 {offsets = [0, 32], sizes = [16, 16], strides = [1, 1]} : vector<16x64xf32> to vector<16x16xf32>
    %176 = vector.broadcast %174 : vector<16x1xf32> to vector<16x16xf32>
    %177 = arith.mulf %176, %175 : vector<16x16xf32>
    %178 = arith.truncf %173 : vector<16x16xf32> to vector<16x16xbf16>
    %179 = arith.truncf %177 : vector<16x16xf32> to vector<16x16xbf16>
    %cst_42 = arith.constant dense<0.000000e+00> : vector<16x16xf32>
    %180 = tpu.matmul %178, %179, %cst_42 {dimension_numbers = #tpu.dot_dimension_numbers<[1], [0], [0], [1], [0, 0, 1, 1], [], []>} : vector<16x16xbf16>, vector<16x16xbf16>, vector<16x16xf32> -> vector<16x16xf32>
    %c0_43 = arith.constant 0 : index
    %c32 = arith.constant 32 : index
    %181 = vector.load %arg7[%c0_43, %c32] : memref<16x64xf32, #tpu.memory_space<vmem>>, vector<16x16xf32>
    tpu.vector_store %arg7[%c0_43, %c32], %180 {strides = array<i32>} : memref<16x64xf32, #tpu.memory_space<vmem>>, vector<16x16xf32>,
    %182 = vector.extract_strided_slice %119 {offsets = [0, 3], sizes = [16, 1], strides = [1, 1]} : vector<16x8xf32> to vector<16x1xf32>
    %183 = vector.extract_strided_slice %120 {offsets = [3, 0], sizes = [1, 16], strides = [1, 1]} : vector<8x16xf32> to vector<1x16xf32>
    %184 = vector.broadcast %182 : vector<16x1xf32> to vector<16x16xf32>
    %185 = vector.broadcast %183 : vector<1x16xf32> to vector<16x16xf32>
    %186 = arith.subf %184, %185 : vector<16x16xf32>
    %187 = arith.mulf %186, %14 : vector<16x16xf32>
    %188 = vector.extract_strided_slice %45 {offsets = [0, 3], sizes = [1, 1], strides = [1, 1]} : vector<1x4xf32> to vector<1x1xf32>
    %189 = vector.broadcast %188 : vector<1x1xf32> to vector<16x16xf32>
    %190 = arith.mulf %189, %187 : vector<16x16xf32>
    %191 = math.exp %190 : vector<16x16xf32>
    %192 = arith.mulf %191, %124 : vector<16x16xf32>
    %193 = vector.extract_strided_slice %116 {offsets = [0, 3], sizes = [16, 1], strides = [1, 1]} : vector<16x4xf32> to vector<16x1xf32>
    %194 = vector.extract_strided_slice %104 {offsets = [0, 48], sizes = [16, 16], strides = [1, 1]} : vector<16x64xf32> to vector<16x16xf32>
    %195 = vector.broadcast %193 : vector<16x1xf32> to vector<16x16xf32>
    %196 = arith.mulf %195, %194 : vector<16x16xf32>
    %197 = arith.truncf %192 : vector<16x16xf32> to vector<16x16xbf16>
    %198 = arith.truncf %196 : vector<16x16xf32> to vector<16x16xbf16>
    %cst_44 = arith.constant dense<0.000000e+00> : vector<16x16xf32>
    %199 = tpu.matmul %197, %198, %cst_44 {dimension_numbers = #tpu.dot_dimension_numbers<[1], [0], [0], [1], [0, 0, 1, 1], [], []>} : vector<16x16xbf16>, vector<16x16xbf16>, vector<16x16xf32> -> vector<16x16xf32>
    %c0_45 = arith.constant 0 : index
    %c48 = arith.constant 48 : index
    %200 = vector.load %arg7[%c0_45, %c48] : memref<16x64xf32, #tpu.memory_space<vmem>>, vector<16x16xf32>
    tpu.vector_store %arg7[%c0_45, %c48], %199 {strides = array<i32>} : memref<16x64xf32, #tpu.memory_space<vmem>>, vector<16x16xf32>,
    %c0_46 = arith.constant 0 : index
    %c0_47 = arith.constant 0 : index
    %201 = vector.load %arg7[%c0_46, %c0_47] : memref<16x64xf32, #tpu.memory_space<vmem>>, vector<16x64xf32>
    %202 = vector.broadcast %43 : vector<1x64xf32> to vector<16x64xf32>
    %203 = arith.mulf %202, %104 : vector<16x64xf32>
    %204 = arith.addf %201, %203 : vector<16x64xf32>
    %cst_48 = arith.constant 0.000000e+00 : f32
    %205 = vector.broadcast %cst_48 : f32 to vector<16x64xf32>
    %206 = arith.subf %205, %64 : vector<16x64xf32>
    %207 = math.exp %206 : vector<16x64xf32>
    %cst_49 = arith.constant 1.000000e+00 : f32
    %208 = vector.broadcast %cst_49 : f32 to vector<16x64xf32>
    %209 = arith.addf %208, %207 : vector<16x64xf32>
    %cst_50 = arith.constant 1.000000e+00 : f32
    %210 = vector.broadcast %cst_50 : f32 to vector<16x64xf32>
    %211 = arith.divf %210, %209 : vector<16x64xf32>
    %212 = arith.mulf %64, %211 : vector<16x64xf32>
    %213 = arith.mulf %204, %212 : vector<16x64xf32>
    %214 = arith.mulf %213, %213 : vector<16x64xf32>
    %cst_51 = arith.constant dense<0.000000e+00> : vector<16xf32>
    %215 = vector.multi_reduction <add>, %214, %cst_51 [1] : vector<16x64xf32> to vector<16xf32>
    %216 = vector.shape_cast %215 : vector<16xf32> to vector<16x1xf32>
    %cst_52 = arith.constant 6.400000e+01 : f32
    %217 = vector.broadcast %cst_52 : f32 to vector<16x1xf32>
    %218 = arith.divf %216, %217 : vector<16x1xf32>
    %cst_53 = arith.constant 9.99999974E-6 : f32
    %219 = vector.broadcast %cst_53 : f32 to vector<16x1xf32>
    %220 = arith.addf %218, %219 : vector<16x1xf32>
    %221 = math.rsqrt %220 : vector<16x1xf32>
    %222 = vector.broadcast %221 : vector<16x1xf32> to vector<16x64xf32>
    %223 = arith.mulf %213, %222 : vector<16x64xf32>
    %224 = vector.broadcast %42 : vector<1x64xf32> to vector<16x64xf32>
    %225 = arith.mulf %223, %224 : vector<16x64xf32>
    %226 = arith.truncf %225 : vector<16x64xf32> to vector<16x64xbf16>
    %c0_54 = arith.constant 0 : index
    %c0_55 = arith.constant 0 : index
    %c0_56 = arith.constant 0 : index
    %227 = vector.load %arg5[%c0_54, %c0_55, %c0_56] : memref<2x64x32xbf16, #tpu.memory_space<vmem>>, vector<1x64x32xbf16>
    %228 = vector.shape_cast %227 : vector<1x64x32xbf16> to vector<64x32xbf16>
    %cst_57 = arith.constant dense<0.000000e+00> : vector<16x32xf32>
    %229 = tpu.matmul %226, %228, %cst_57 {dimension_numbers = #tpu.dot_dimension_numbers<[1], [0], [0], [1], [0, 0, 1, 1], [], []>} : vector<16x64xbf16>, vector<64x32xbf16>, vector<16x32xf32> -> vector<16x32xf32>
    %c1_58 = arith.constant 1 : index
    %c0_59 = arith.constant 0 : index
    %c0_60 = arith.constant 0 : index
    %230 = vector.load %arg4[%c1_58, %c0_59, %c0_60] : memref<3x8x128xf32, #tpu.memory_space<vmem>>, vector<1x8x128xf32>
    %231 = vector.shape_cast %230 : vector<1x8x128xf32> to vector<8x128xf32>
    %232 = vector.extract_strided_slice %231 {offsets = [0, 0], sizes = [1, 32], strides = [1, 1]} : vector<8x128xf32> to vector<1x32xf32>
    %233 = vector.extract_strided_slice %231 {offsets = [1, 0], sizes = [1, 64], strides = [1, 1]} : vector<8x128xf32> to vector<1x64xf32>
    %234 = vector.extract_strided_slice %231 {offsets = [2, 0], sizes = [1, 64], strides = [1, 1]} : vector<8x128xf32> to vector<1x64xf32>
    %235 = vector.extract_strided_slice %231 {offsets = [3, 0], sizes = [1, 128], strides = [1, 1]} : vector<8x128xf32> to vector<1x128xf32>
    %236 = vector.extract_strided_slice %231 {offsets = [4, 0], sizes = [1, 4], strides = [1, 1]} : vector<8x128xf32> to vector<1x4xf32>
    %237 = vector.extract_strided_slice %231 {offsets = [5, 0], sizes = [1, 4], strides = [1, 1]} : vector<8x128xf32> to vector<1x4xf32>
    %238 = arith.addf %229, %47 : vector<16x32xf32>
    %239 = arith.mulf %238, %238 : vector<16x32xf32>
    %cst_61 = arith.constant dense<0.000000e+00> : vector<16xf32>
    %240 = vector.multi_reduction <add>, %239, %cst_61 [1] : vector<16x32xf32> to vector<16xf32>
    %241 = vector.shape_cast %240 : vector<16xf32> to vector<16x1xf32>
    %cst_62 = arith.constant 3.200000e+01 : f32
    %242 = vector.broadcast %cst_62 : f32 to vector<16x1xf32>
    %243 = arith.divf %241, %242 : vector<16x1xf32>
    %cst_63 = arith.constant 9.99999974E-6 : f32
    %244 = vector.broadcast %cst_63 : f32 to vector<16x1xf32>
    %245 = arith.addf %243, %244 : vector<16x1xf32>
    %246 = math.rsqrt %245 : vector<16x1xf32>
    %247 = vector.broadcast %246 : vector<16x1xf32> to vector<16x32xf32>
    %248 = arith.mulf %238, %247 : vector<16x32xf32>
    %249 = vector.broadcast %232 : vector<1x32xf32> to vector<16x32xf32>
    %250 = arith.mulf %248, %249 : vector<16x32xf32>
    %251 = arith.truncf %250 : vector<16x32xf32> to vector<16x32xbf16>
    %c1_64 = arith.constant 1 : index
    %c0_65 = arith.constant 0 : index
    %c0_66 = arith.constant 0 : index
    %252 = vector.load %arg2[%c1_64, %c0_65, %c0_66] : memref<2x32x256xbf16, #tpu.memory_space<vmem>>, vector<1x32x256xbf16>
    %253 = vector.shape_cast %252 : vector<1x32x256xbf16> to vector<32x256xbf16>
    %cst_67 = arith.constant dense<0.000000e+00> : vector<16x256xf32>
    %254 = tpu.matmul %251, %253, %cst_67 {dimension_numbers = #tpu.dot_dimension_numbers<[1], [0], [0], [1], [0, 0, 1, 1], [], []>} : vector<16x32xbf16>, vector<32x256xbf16>, vector<16x256xf32> -> vector<16x256xf32>
    %255 = vector.extract_strided_slice %254 {offsets = [0, 0], sizes = [16, 64], strides = [1, 1]} : vector<16x256xf32> to vector<16x64xf32>
    %256 = vector.extract_strided_slice %254 {offsets = [0, 64], sizes = [16, 4], strides = [1, 1]} : vector<16x256xf32> to vector<16x4xf32>
    %257 = vector.extract_strided_slice %254 {offsets = [0, 128], sizes = [16, 128], strides = [1, 1]} : vector<16x256xf32> to vector<16x128xf32>
    %c3_68 = arith.constant 3 : index
    %c0_69 = arith.constant 0 : index
    %258 = vector.load %arg8[%c3_68, %c0_69] : memref<19x128xf32, #tpu.memory_space<vmem>>, vector<16x128xf32>
    tpu.vector_store %arg8[%c3_68, %c0_69], %257 {strides = array<i32>} : memref<19x128xf32, #tpu.memory_space<vmem>>, vector<16x128xf32>,
    %c1_70 = arith.constant 1 : index
    %c0_71 = arith.constant 0 : index
    %c0_72 = arith.constant 0 : index
    %259 = vector.load %arg3[%c1_70, %c0_71, %c0_72] : memref<2x4x128xf32, #tpu.memory_space<vmem>>, vector<1x4x128xf32>
    %260 = vector.shape_cast %259 : vector<1x4x128xf32> to vector<4x128xf32>
    %261 = vector.extract_strided_slice %260 {offsets = [3, 0], sizes = [1, 128], strides = [1, 1]} : vector<4x128xf32> to vector<1x128xf32>
    %262 = vector.broadcast %261 : vector<1x128xf32> to vector<16x128xf32>
    %263 = arith.mulf %262, %257 : vector<16x128xf32>
    %264 = vector.broadcast %235 : vector<1x128xf32> to vector<16x128xf32>
    %265 = arith.addf %264, %263 : vector<16x128xf32>
    %266 = vector.extract_strided_slice %260 {offsets = [0, 0], sizes = [1, 128], strides = [1, 1]} : vector<4x128xf32> to vector<1x128xf32>
    %267 = vector.broadcast %266 : vector<1x128xf32> to vector<16x128xf32>
    %268 = vector.broadcast %34 : vector<16x1xf32> to vector<16x128xf32>
    %269 = arith.mulf %267, %268 : vector<16x128xf32>
    %c0_73 = arith.constant 0 : index
    %c0_74 = arith.constant 0 : index
    %270 = vector.load %arg8[%c0_73, %c0_74] : memref<19x128xf32, #tpu.memory_space<vmem>>, vector<16x128xf32>
    %271 = arith.mulf %269, %270 : vector<16x128xf32>
    %272 = arith.addf %265, %271 : vector<16x128xf32>
    %273 = vector.extract_strided_slice %260 {offsets = [1, 0], sizes = [1, 128], strides = [1, 1]} : vector<4x128xf32> to vector<1x128xf32>
    %274 = vector.broadcast %273 : vector<1x128xf32> to vector<16x128xf32>
    %275 = vector.broadcast %30 : vector<16x1xf32> to vector<16x128xf32>
    %276 = arith.mulf %274, %275 : vector<16x128xf32>
    %c1_75 = arith.constant 1 : index
    %c0_76 = arith.constant 0 : index
    %277 = vector.load %arg8[%c1_75, %c0_76] : memref<19x128xf32, #tpu.memory_space<vmem>>, vector<16x128xf32>
    %278 = arith.mulf %276, %277 : vector<16x128xf32>
    %279 = arith.addf %272, %278 : vector<16x128xf32>
    %280 = vector.extract_strided_slice %260 {offsets = [2, 0], sizes = [1, 128], strides = [1, 1]} : vector<4x128xf32> to vector<1x128xf32>
    %281 = vector.broadcast %280 : vector<1x128xf32> to vector<16x128xf32>
    %282 = vector.broadcast %26 : vector<16x1xf32> to vector<16x128xf32>
    %283 = arith.mulf %281, %282 : vector<16x128xf32>
    %c2_77 = arith.constant 2 : index
    %c0_78 = arith.constant 0 : index
    %284 = vector.load %arg8[%c2_77, %c0_78] : memref<19x128xf32, #tpu.memory_space<vmem>>, vector<16x128xf32>
    %285 = arith.mulf %283, %284 : vector<16x128xf32>
    %286 = arith.addf %279, %285 : vector<16x128xf32>
    %cst_79 = arith.constant 0.000000e+00 : f32
    %287 = vector.broadcast %cst_79 : f32 to vector<16x128xf32>
    %288 = arith.subf %287, %286 : vector<16x128xf32>
    %289 = math.exp %288 : vector<16x128xf32>
    %cst_80 = arith.constant 1.000000e+00 : f32
    %290 = vector.broadcast %cst_80 : f32 to vector<16x128xf32>
    %291 = arith.addf %290, %289 : vector<16x128xf32>
    %cst_81 = arith.constant 1.000000e+00 : f32
    %292 = vector.broadcast %cst_81 : f32 to vector<16x128xf32>
    %293 = arith.divf %292, %291 : vector<16x128xf32>
    %294 = arith.mulf %286, %293 : vector<16x128xf32>
    %295 = vector.extract_strided_slice %294 {offsets = [0, 0], sizes = [16, 64], strides = [1, 1]} : vector<16x128xf32> to vector<16x64xf32>
    %296 = vector.extract_strided_slice %294 {offsets = [0, 64], sizes = [16, 16], strides = [1, 1]} : vector<16x128xf32> to vector<16x16xf32>
    %297 = vector.extract_strided_slice %294 {offsets = [0, 80], sizes = [16, 16], strides = [1, 1]} : vector<16x128xf32> to vector<16x16xf32>
    %298 = vector.broadcast %237 : vector<1x4xf32> to vector<16x4xf32>
    %299 = arith.addf %256, %298 : vector<16x4xf32>
    %300 = math.absf %299 : vector<16x4xf32>
    %cst_82 = arith.constant 0.000000e+00 : f32
    %301 = vector.broadcast %cst_82 : f32 to vector<16x4xf32>
    %302 = arith.subf %301, %300 : vector<16x4xf32>
    %303 = math.exp %302 : vector<16x4xf32>
    %304 = math.log1p %303 : vector<16x4xf32>
    %cst_83 = arith.constant 0.000000e+00 : f32
    %305 = vector.broadcast %cst_83 : f32 to vector<16x4xf32>
    %306 = arith.maximumf %299, %305 : vector<16x4xf32>
    %307 = arith.addf %304, %306 : vector<16x4xf32>
    %cst_84 = arith.constant 0.000000e+00 : f32
    %308 = vector.broadcast %cst_84 : f32 to vector<16x4xf32>
    %309 = tpu.concatenate %307, %308 in 1 : vector<16x4xf32>, vector<16x4xf32> -> vector<16x8xf32>
    %cst_85 = arith.constant dense<0.000000e+00> : vector<16x8xf32>
    %310 = tpu.matmul %14, %309, %cst_85 {dimension_numbers = #tpu.dot_dimension_numbers<[1], [0], [0], [1], [0, 0, 1, 1], [], []>} : vector<16x16xf32>, vector<16x8xf32>, vector<16x8xf32> -> vector<16x8xf32>
    %311 = tpu.transpose %310, [1, 0] : vector<16x8xf32> -> vector<8x16xf32>
    %312 = arith.truncf %297 : vector<16x16xf32> to vector<16x16xbf16>
    %313 = arith.truncf %296 : vector<16x16xf32> to vector<16x16xbf16>
    %cst_86 = arith.constant dense<0.000000e+00> : vector<16x16xf32>
    %314 = tpu.matmul %312, %313, %cst_86 {dimension_numbers = #tpu.dot_dimension_numbers<[1], [1], [0], [0], [0, 0, 1, 0], [], []>} : vector<16x16xbf16>, vector<16x16xbf16>, vector<16x16xf32> -> vector<16x16xf32>
    %315 = arith.mulf %314, %14 : vector<16x16xf32>
    %316 = vector.extract_strided_slice %310 {offsets = [0, 0], sizes = [16, 1], strides = [1, 1]} : vector<16x8xf32> to vector<16x1xf32>
    %317 = vector.extract_strided_slice %311 {offsets = [0, 0], sizes = [1, 16], strides = [1, 1]} : vector<8x16xf32> to vector<1x16xf32>
    %318 = vector.broadcast %316 : vector<16x1xf32> to vector<16x16xf32>
    %319 = vector.broadcast %317 : vector<1x16xf32> to vector<16x16xf32>
    %320 = arith.subf %318, %319 : vector<16x16xf32>
    %321 = arith.mulf %320, %14 : vector<16x16xf32>
    %322 = vector.extract_strided_slice %236 {offsets = [0, 0], sizes = [1, 1], strides = [1, 1]} : vector<1x4xf32> to vector<1x1xf32>
    %323 = vector.broadcast %322 : vector<1x1xf32> to vector<16x16xf32>
    %324 = arith.mulf %323, %321 : vector<16x16xf32>
    %325 = math.exp %324 : vector<16x16xf32>
    %326 = arith.mulf %325, %315 : vector<16x16xf32>
    %327 = vector.extract_strided_slice %307 {offsets = [0, 0], sizes = [16, 1], strides = [1, 1]} : vector<16x4xf32> to vector<16x1xf32>
    %328 = vector.extract_strided_slice %295 {offsets = [0, 0], sizes = [16, 16], strides = [1, 1]} : vector<16x64xf32> to vector<16x16xf32>
    %329 = vector.broadcast %327 : vector<16x1xf32> to vector<16x16xf32>
    %330 = arith.mulf %329, %328 : vector<16x16xf32>
    %331 = arith.truncf %326 : vector<16x16xf32> to vector<16x16xbf16>
    %332 = arith.truncf %330 : vector<16x16xf32> to vector<16x16xbf16>
    %cst_87 = arith.constant dense<0.000000e+00> : vector<16x16xf32>
    %333 = tpu.matmul %331, %332, %cst_87 {dimension_numbers = #tpu.dot_dimension_numbers<[1], [0], [0], [1], [0, 0, 1, 1], [], []>} : vector<16x16xbf16>, vector<16x16xbf16>, vector<16x16xf32> -> vector<16x16xf32>
    %c0_88 = arith.constant 0 : index
    %c0_89 = arith.constant 0 : index
    %334 = vector.load %arg7[%c0_88, %c0_89] : memref<16x64xf32, #tpu.memory_space<vmem>>, vector<16x16xf32>
    tpu.vector_store %arg7[%c0_88, %c0_89], %333 {strides = array<i32>} : memref<16x64xf32, #tpu.memory_space<vmem>>, vector<16x16xf32>,
    %335 = vector.extract_strided_slice %310 {offsets = [0, 1], sizes = [16, 1], strides = [1, 1]} : vector<16x8xf32> to vector<16x1xf32>
    %336 = vector.extract_strided_slice %311 {offsets = [1, 0], sizes = [1, 16], strides = [1, 1]} : vector<8x16xf32> to vector<1x16xf32>
    %337 = vector.broadcast %335 : vector<16x1xf32> to vector<16x16xf32>
    %338 = vector.broadcast %336 : vector<1x16xf32> to vector<16x16xf32>
    %339 = arith.subf %337, %338 : vector<16x16xf32>
    %340 = arith.mulf %339, %14 : vector<16x16xf32>
    %341 = vector.extract_strided_slice %236 {offsets = [0, 1], sizes = [1, 1], strides = [1, 1]} : vector<1x4xf32> to vector<1x1xf32>
    %342 = vector.broadcast %341 : vector<1x1xf32> to vector<16x16xf32>
    %343 = arith.mulf %342, %340 : vector<16x16xf32>
    %344 = math.exp %343 : vector<16x16xf32>
    %345 = arith.mulf %344, %315 : vector<16x16xf32>
    %346 = vector.extract_strided_slice %307 {offsets = [0, 1], sizes = [16, 1], strides = [1, 1]} : vector<16x4xf32> to vector<16x1xf32>
    %347 = vector.extract_strided_slice %295 {offsets = [0, 16], sizes = [16, 16], strides = [1, 1]} : vector<16x64xf32> to vector<16x16xf32>
    %348 = vector.broadcast %346 : vector<16x1xf32> to vector<16x16xf32>
    %349 = arith.mulf %348, %347 : vector<16x16xf32>
    %350 = arith.truncf %345 : vector<16x16xf32> to vector<16x16xbf16>
    %351 = arith.truncf %349 : vector<16x16xf32> to vector<16x16xbf16>
    %cst_90 = arith.constant dense<0.000000e+00> : vector<16x16xf32>
    %352 = tpu.matmul %350, %351, %cst_90 {dimension_numbers = #tpu.dot_dimension_numbers<[1], [0], [0], [1], [0, 0, 1, 1], [], []>} : vector<16x16xbf16>, vector<16x16xbf16>, vector<16x16xf32> -> vector<16x16xf32>
    %c0_91 = arith.constant 0 : index
    %c16_92 = arith.constant 16 : index
    %353 = vector.load %arg7[%c0_91, %c16_92] : memref<16x64xf32, #tpu.memory_space<vmem>>, vector<16x16xf32>
    tpu.vector_store %arg7[%c0_91, %c16_92], %352 {strides = array<i32>} : memref<16x64xf32, #tpu.memory_space<vmem>>, vector<16x16xf32>,
    %354 = vector.extract_strided_slice %310 {offsets = [0, 2], sizes = [16, 1], strides = [1, 1]} : vector<16x8xf32> to vector<16x1xf32>
    %355 = vector.extract_strided_slice %311 {offsets = [2, 0], sizes = [1, 16], strides = [1, 1]} : vector<8x16xf32> to vector<1x16xf32>
    %356 = vector.broadcast %354 : vector<16x1xf32> to vector<16x16xf32>
    %357 = vector.broadcast %355 : vector<1x16xf32> to vector<16x16xf32>
    %358 = arith.subf %356, %357 : vector<16x16xf32>
    %359 = arith.mulf %358, %14 : vector<16x16xf32>
    %360 = vector.extract_strided_slice %236 {offsets = [0, 2], sizes = [1, 1], strides = [1, 1]} : vector<1x4xf32> to vector<1x1xf32>
    %361 = vector.broadcast %360 : vector<1x1xf32> to vector<16x16xf32>
    %362 = arith.mulf %361, %359 : vector<16x16xf32>
    %363 = math.exp %362 : vector<16x16xf32>
    %364 = arith.mulf %363, %315 : vector<16x16xf32>
    %365 = vector.extract_strided_slice %307 {offsets = [0, 2], sizes = [16, 1], strides = [1, 1]} : vector<16x4xf32> to vector<16x1xf32>
    %366 = vector.extract_strided_slice %295 {offsets = [0, 32], sizes = [16, 16], strides = [1, 1]} : vector<16x64xf32> to vector<16x16xf32>
    %367 = vector.broadcast %365 : vector<16x1xf32> to vector<16x16xf32>
    %368 = arith.mulf %367, %366 : vector<16x16xf32>
    %369 = arith.truncf %364 : vector<16x16xf32> to vector<16x16xbf16>
    %370 = arith.truncf %368 : vector<16x16xf32> to vector<16x16xbf16>
    %cst_93 = arith.constant dense<0.000000e+00> : vector<16x16xf32>
    %371 = tpu.matmul %369, %370, %cst_93 {dimension_numbers = #tpu.dot_dimension_numbers<[1], [0], [0], [1], [0, 0, 1, 1], [], []>} : vector<16x16xbf16>, vector<16x16xbf16>, vector<16x16xf32> -> vector<16x16xf32>
    %c0_94 = arith.constant 0 : index
    %c32_95 = arith.constant 32 : index
    %372 = vector.load %arg7[%c0_94, %c32_95] : memref<16x64xf32, #tpu.memory_space<vmem>>, vector<16x16xf32>
    tpu.vector_store %arg7[%c0_94, %c32_95], %371 {strides = array<i32>} : memref<16x64xf32, #tpu.memory_space<vmem>>, vector<16x16xf32>,
    %373 = vector.extract_strided_slice %310 {offsets = [0, 3], sizes = [16, 1], strides = [1, 1]} : vector<16x8xf32> to vector<16x1xf32>
    %374 = vector.extract_strided_slice %311 {offsets = [3, 0], sizes = [1, 16], strides = [1, 1]} : vector<8x16xf32> to vector<1x16xf32>
    %375 = vector.broadcast %373 : vector<16x1xf32> to vector<16x16xf32>
    %376 = vector.broadcast %374 : vector<1x16xf32> to vector<16x16xf32>
    %377 = arith.subf %375, %376 : vector<16x16xf32>
    %378 = arith.mulf %377, %14 : vector<16x16xf32>
    %379 = vector.extract_strided_slice %236 {offsets = [0, 3], sizes = [1, 1], strides = [1, 1]} : vector<1x4xf32> to vector<1x1xf32>
    %380 = vector.broadcast %379 : vector<1x1xf32> to vector<16x16xf32>
    %381 = arith.mulf %380, %378 : vector<16x16xf32>
    %382 = math.exp %381 : vector<16x16xf32>
    %383 = arith.mulf %382, %315 : vector<16x16xf32>
    %384 = vector.extract_strided_slice %307 {offsets = [0, 3], sizes = [16, 1], strides = [1, 1]} : vector<16x4xf32> to vector<16x1xf32>
    %385 = vector.extract_strided_slice %295 {offsets = [0, 48], sizes = [16, 16], strides = [1, 1]} : vector<16x64xf32> to vector<16x16xf32>
    %386 = vector.broadcast %384 : vector<16x1xf32> to vector<16x16xf32>
    %387 = arith.mulf %386, %385 : vector<16x16xf32>
    %388 = arith.truncf %383 : vector<16x16xf32> to vector<16x16xbf16>
    %389 = arith.truncf %387 : vector<16x16xf32> to vector<16x16xbf16>
    %cst_96 = arith.constant dense<0.000000e+00> : vector<16x16xf32>
    %390 = tpu.matmul %388, %389, %cst_96 {dimension_numbers = #tpu.dot_dimension_numbers<[1], [0], [0], [1], [0, 0, 1, 1], [], []>} : vector<16x16xbf16>, vector<16x16xbf16>, vector<16x16xf32> -> vector<16x16xf32>
    %c0_97 = arith.constant 0 : index
    %c48_98 = arith.constant 48 : index
    %391 = vector.load %arg7[%c0_97, %c48_98] : memref<16x64xf32, #tpu.memory_space<vmem>>, vector<16x16xf32>
    tpu.vector_store %arg7[%c0_97, %c48_98], %390 {strides = array<i32>} : memref<16x64xf32, #tpu.memory_space<vmem>>, vector<16x16xf32>,
    %c0_99 = arith.constant 0 : index
    %c0_100 = arith.constant 0 : index
    %392 = vector.load %arg7[%c0_99, %c0_100] : memref<16x64xf32, #tpu.memory_space<vmem>>, vector<16x64xf32>
    %393 = vector.broadcast %234 : vector<1x64xf32> to vector<16x64xf32>
    %394 = arith.mulf %393, %295 : vector<16x64xf32>
    %395 = arith.addf %392, %394 : vector<16x64xf32>
    %cst_101 = arith.constant 0.000000e+00 : f32
    %396 = vector.broadcast %cst_101 : f32 to vector<16x64xf32>
    %397 = arith.subf %396, %255 : vector<16x64xf32>
    %398 = math.exp %397 : vector<16x64xf32>
    %cst_102 = arith.constant 1.000000e+00 : f32
    %399 = vector.broadcast %cst_102 : f32 to vector<16x64xf32>
    %400 = arith.addf %399, %398 : vector<16x64xf32>
    %cst_103 = arith.constant 1.000000e+00 : f32
    %401 = vector.broadcast %cst_103 : f32 to vector<16x64xf32>
    %402 = arith.divf %401, %400 : vector<16x64xf32>
    %403 = arith.mulf %255, %402 : vector<16x64xf32>
    %404 = arith.mulf %395, %403 : vector<16x64xf32>
    %405 = arith.mulf %404, %404 : vector<16x64xf32>
    %cst_104 = arith.constant dense<0.000000e+00> : vector<16xf32>
    %406 = vector.multi_reduction <add>, %405, %cst_104 [1] : vector<16x64xf32> to vector<16xf32>
    %407 = vector.shape_cast %406 : vector<16xf32> to vector<16x1xf32>
    %cst_105 = arith.constant 6.400000e+01 : f32
    %408 = vector.broadcast %cst_105 : f32 to vector<16x1xf32>
    %409 = arith.divf %407, %408 : vector<16x1xf32>
    %cst_106 = arith.constant 9.99999974E-6 : f32
    %410 = vector.broadcast %cst_106 : f32 to vector<16x1xf32>
    %411 = arith.addf %409, %410 : vector<16x1xf32>
    %412 = math.rsqrt %411 : vector<16x1xf32>
    %413 = vector.broadcast %412 : vector<16x1xf32> to vector<16x64xf32>
    %414 = arith.mulf %404, %413 : vector<16x64xf32>
    %415 = vector.broadcast %233 : vector<1x64xf32> to vector<16x64xf32>
    %416 = arith.mulf %414, %415 : vector<16x64xf32>
    %417 = arith.truncf %416 : vector<16x64xf32> to vector<16x64xbf16>
    %c1_107 = arith.constant 1 : index
    %c0_108 = arith.constant 0 : index
    %c0_109 = arith.constant 0 : index
    %418 = vector.load %arg5[%c1_107, %c0_108, %c0_109] : memref<2x64x32xbf16, #tpu.memory_space<vmem>>, vector<1x64x32xbf16>
    %419 = vector.shape_cast %418 : vector<1x64x32xbf16> to vector<64x32xbf16>
    %cst_110 = arith.constant dense<0.000000e+00> : vector<16x32xf32>
    %420 = tpu.matmul %417, %419, %cst_110 {dimension_numbers = #tpu.dot_dimension_numbers<[1], [0], [0], [1], [0, 0, 1, 1], [], []>} : vector<16x64xbf16>, vector<64x32xbf16>, vector<16x32xf32> -> vector<16x32xf32>
    %c2_111 = arith.constant 2 : index
    %c0_112 = arith.constant 0 : index
    %c0_113 = arith.constant 0 : index
    %421 = vector.load %arg4[%c2_111, %c0_112, %c0_113] : memref<3x8x128xf32, #tpu.memory_space<vmem>>, vector<1x8x128xf32>
    %422 = vector.shape_cast %421 : vector<1x8x128xf32> to vector<8x128xf32>
    %423 = arith.addf %420, %238 : vector<16x32xf32>
    %424 = vector.extract_strided_slice %422 {offsets = [0, 0], sizes = [1, 32], strides = [1, 1]} : vector<8x128xf32> to vector<1x32xf32>
    %425 = arith.mulf %423, %423 : vector<16x32xf32>
    %cst_114 = arith.constant dense<0.000000e+00> : vector<16xf32>
    %426 = vector.multi_reduction <add>, %425, %cst_114 [1] : vector<16x32xf32> to vector<16xf32>
    %427 = vector.shape_cast %426 : vector<16xf32> to vector<16x1xf32>
    %cst_115 = arith.constant 3.200000e+01 : f32
    %428 = vector.broadcast %cst_115 : f32 to vector<16x1xf32>
    %429 = arith.divf %427, %428 : vector<16x1xf32>
    %cst_116 = arith.constant 9.99999974E-6 : f32
    %430 = vector.broadcast %cst_116 : f32 to vector<16x1xf32>
    %431 = arith.addf %429, %430 : vector<16x1xf32>
    %432 = math.rsqrt %431 : vector<16x1xf32>
    %433 = vector.broadcast %432 : vector<16x1xf32> to vector<16x32xf32>
    %434 = arith.mulf %423, %433 : vector<16x32xf32>
    %435 = vector.broadcast %424 : vector<1x32xf32> to vector<16x32xf32>
    %436 = arith.mulf %434, %435 : vector<16x32xf32>
    %437 = vector.extract_strided_slice %422 {offsets = [1, 0], sizes = [1, 32], strides = [1, 1]} : vector<8x128xf32> to vector<1x32xf32>
    %438 = vector.broadcast %437 : vector<1x32xf32> to vector<16x32xf32>
    %439 = arith.addf %436, %438 : vector<16x32xf32>
    %c0_117 = arith.constant 0 : index
    %c0_118 = arith.constant 0 : index
    %440 = vector.load %arg6[%c0_117, %c0_118] : memref<16x32xf32, #tpu.memory_space<vmem>>, vector<16x32xf32>
    tpu.vector_store %arg6[%c0_117, %c0_118], %439 {strides = array<i32>} : memref<16x32xf32, #tpu.memory_space<vmem>>, vector<16x32xf32>,
    return
  }
  func.func @transform_0(%arg0: i32) -> (i32, i32) {
    %c0_i32 = arith.constant 0 : i32
    %c0_i32_0 = arith.constant 0 : i32
    return %arg0, %c0_i32 : i32, i32
  }
  func.func @transform_1(%arg0: i32) -> (i32, i32, i32) {
    %c0_i32 = arith.constant 0 : i32
    %c0_i32_0 = arith.constant 0 : i32
    %c0_i32_1 = arith.constant 0 : i32
    %c0_i32_2 = arith.constant 0 : i32
    return %c0_i32, %c0_i32_0, %c0_i32_1 : i32, i32, i32
  }
  func.func @transform_2(%arg0: i32) -> (i32, i32, i32) {
    %c0_i32 = arith.constant 0 : i32
    %c0_i32_0 = arith.constant 0 : i32
    %c0_i32_1 = arith.constant 0 : i32
    %c0_i32_2 = arith.constant 0 : i32
    return %c0_i32, %c0_i32_0, %c0_i32_1 : i32, i32, i32
  }
  func.func @transform_3(%arg0: i32) -> (i32, i32, i32) {
    %c0_i32 = arith.constant 0 : i32
    %c0_i32_0 = arith.constant 0 : i32
    %c0_i32_1 = arith.constant 0 : i32
    %c0_i32_2 = arith.constant 0 : i32
    return %c0_i32, %c0_i32_0, %c0_i32_1 : i32, i32, i32
  }
  func.func @transform_4(%arg0: i32) -> (i32, i32, i32) {
    %c0_i32 = arith.constant 0 : i32
    %c0_i32_0 = arith.constant 0 : i32
    %c0_i32_1 = arith.constant 0 : i32
    %c0_i32_2 = arith.constant 0 : i32
    return %c0_i32, %c0_i32_0, %c0_i32_1 : i32, i32, i32
  }
  func.func @transform_5(%arg0: i32) -> (i32, i32) {
    %c0_i32 = arith.constant 0 : i32
    %c0_i32_0 = arith.constant 0 : i32
    return %arg0, %c0_i32 : i32, i32
  }
}

</mosaic_0001>

<bundles_post_ra>
// kernel: backbone_forward.1
= control target key start
LH: loop header
LB: loop body
LE: loop exit
PB: predicated region body
PF: predicated region fallthrough
CT: control target
= control target key end

     0   :  { %10 = vsyncpa [#allocation5], 0  ;;  %s2975_s0 = inlined_call_operand.vmem [shape: f32[16,32], index: 0, kind: input, shape index: {}]   ;;  %s2976_s1 = inlined_call_operand.vmem [shape: bf16[2,32,256], index: 1, kind: input, shape index: {}]   ;;  %s2977_s2 = inlined_call_operand.hbm [shape: f32[2,4,128], index: 2, kind: input, shape index: {}]   ;;  %s2978_s3 = inlined_call_operand.vmem [shape: f32[3,8,128], index: 3, kind: input, shape index: {}]   ;;  %s2979_s4 = inlined_call_operand.vmem [shape: bf16[2,64,32], index: 4, kind: input, shape index: {}]   ;;  %s2980_s5 = inlined_call_operand.hbm [shape: f32[16,32], index: 5, kind: output, shape index: {}]  }
   0x1   :  { %11 = vsyncpa [#allocation6], 0  ;;  %s2376_s18 = smov [#allocation4]   ;;  %s2328_s22 = scalar_lea.hbm %s2977_s2, 128 }
   0x2   :  { %s21_s19 = sshll.u32 %s2376_s18, 4  ;;  %p2329_p0 = scmp.ne.s32.totalorder %s2977_s2, %s2328_s22  ;;  %s22_s19 = int_to_ptr.vmem [resolvable:$true] %s21_s19 }
   0x3   :  { %p2332_p1 = scmp.lt.u32.totalorder %s2328_s22, %s2977_s2 }
   0x5   :  { %p2334_p2 = pnand %p2332_p1, %p2329_p0 }
   0x7   :  { %2337 = shalt.err (!%p2334_p2)
}
   0x8   :  { %s2338_s27 = scalar_lea.vmem %s22_s19, 128  ;;  %p2343_p4 = scmp.lt.s32.totalorder %s22_s19, %s22_s19 }
   0x9   :  { %p2339_p3 = scmp.ne.s32.totalorder %s22_s19, %s2338_s27  ;;  %p2344_p5 = scmp.lt.s32.totalorder %s2338_s27, %s2338_s27 }
   0xb   :  { %p2345_p6 = por %p2344_p5, %p2343_p4 }
   0xd   :  { %p2346_p7 = pnand %p2345_p6, %p2339_p3 }
   0xf   :  { %2349 = shalt.err (!%p2346_p7)
}
  0x10   :  { %s2377_s28 = smov 64   ;;  %s2378_s29 = smov 4  }
  0x11   :  { %27 = dma.hbm_to_vmem [thread:$0]  %s2977_s2, 128, %s22_s19, [#allocation5], %s2377_s28, %s2377_s28, %s2378_s29  }
  0x12   :  { %2372 = dma.done.wait [#allocation5], 128  }
  0x13   :  { %2373 = vsyncadd [#allocation5], 4294967168  ;;  %v83_v0 = vld [vmem:[%s2975_s0] sm:$0xff]  ;;  %vm90_vm0 = vcmask 261120   ;;  %v84_v1 = vld [vmem:[%s2975_s0 + $0x8] sm:$0xff]  ;;  %v2379_v9 = vmov 0   ;;  %v36_v11 = vlaneseq }
  0x14   :  { %v88_v2 = vmul.f32 %v83_v0, %v83_v0  ;;  %v89_v3 = vmul.f32 %v84_v1, %v84_v1  ;;  %v2206_v6 = vld [vmem:[%s2976_s1 + $0x4] ss:$8 sps:$4 sm:$0xff]   ;;  %v2208_v7 = vld [vmem:[%s2976_s1] ss:$8 sps:$4 sm:$0xff]   ;;  %v2209_v8 = vld [vmem:[%s2976_s1 + $0x14] ss:$8 sps:$4 sm:$0xff]   ;;  %172 = vmatprep.mubr.bf16.mxu0 %v2379_v9 }
  0x15   :  { %140 = vmatprep.subr.bf16.mxu0 %v2206_v6  ;;  %v2211_v10 = vld [vmem:[%s2976_s1 + $0x10] ss:$8 sps:$4 sm:$0xff]   ;;  %v2466_v12 = vshrl.u32 %v36_v11, 7  ;;  %v2472_v14 = vld [vmem:[%s2978_s3] sm:$0xff]  ;;  %v2380_v31 = vmov 0.0   ;;  %v42_v33 = vand.u32 127, %v36_v11 }
  0x16   :  { %v91_v4 = vsel %vm90_vm0, %v88_v2, 0.0  ;;  %v94_v5 = vsel %vm90_vm0, %v89_v3, 0.0  ;;  %141 = vmatpush1.bf16.msra.mxu0 %v2208_v7  ;;  %82 = vst [vmem:[#allocation3] sm:$0x7] %v2380_v31  ;;  %2024 = vmatprep.subr.bf16.mxu1 %v2380_v31  ;;  %v2381_v41 = vmov 67   ;;  %v2382_v42 = vmov 65  }
  0x17   :  { %92 = vadd.xlane.f32.xlu0 %v91_v4  ;;  %142 = vmatprep.subr.bf16.mxu0 %v2209_v8  ;;  %v250_v13 = vsub.s32 5, %v2466_v12  ;;  %v2479_v22 = vsub.s32 0, %v2466_v12  ;;  %v38_v32 = vadd.s32 8, %v2466_v12  ;;  %v2487_v35 = vcvt.s32.f32 %v42_v33  ;;  %v185_v53 = vld [vmem:[#allocation4] sm:$0xf]  ;;  %s2384_s20 = smov 48  }
  0x18   :  { %2175 = vset.pattern.permute.xlu0 %v2381_v41  ;;  %2173 = vset.pattern.permute.xlu1 %v2382_v42  ;;  %v2503_v43 = vrot.slane %v2472_v14, 4  ;;  %v2507_v44 = vcvt.s32.f32 %v2466_v12  ;;  %v2517_v51 = vsub.s32 3, %v2466_v12  ;;  %v2522_v55 = vsub.s32 1, %v2466_v12  ;;  %s2385_s21 = smov 127   ;;  %s2387_s22 = smov 125  }
  0x19   :  { %v251_v15 = vrot.slane %v2472_v14, %v250_v13  ;;  %v109_v25 = vrot.slane %v2472_v14, %v2479_v22  ;;  %v40_v34 = vcvt.s32.f32 %v38_v32  ;;  %v2490_v36 = vmul.f32 0.125, %v2487_v35  ;;  %s2388_s23 = smov 126   ;;  %s2393_s24 = smov 112  }
  0x1a   :  { %143 = vmatpush1.bf16.msra.mxu0 %v2211_v10  ;;  %2127 = vpush %v2503_v43  ;;  %v2510_v45 = vmul.f32 0.125, %v2507_v44  ;;  %v189_v58 = vrot.slane %v185_v53, %v2517_v51  ;;  %v201_v59 = vrot.slane %v185_v53, %v2479_v22  ;;  %v2530_v60 = vsub.s32 2, %v2466_v12  ;;  %s2394_s25 = smov 96   ;;  %s2395_s26 = smov 80  }
  0x1b   :  { %95 = vadd.xlane.f32.xlu0 %v94_v5  ;;  %253 = vrot.lane.b32.xlu1 %v251_v15, %s2377_s28  ;;  %v45_v37 = vmul.f32 0.125, %v40_v34  ;;  %v49_v38 = vfloor.f32 %v2490_v36  ;;  %vm53_vm2 = vcmp.ge.f32.partialorder %v40_v34, %v2487_v35  ;;  %v213_v3 = vrot.slane %v185_v53, %v2522_v55  ;;  %s2396_s7 = smov 16   ;;  %s2397_s8 = smov 32  }
  0x1c   :  { %v46_v46 = vfloor.f32 %v2510_v45  ;;  %v195_v8 = vrot.slane %v2472_v14, %v2517_v51  ;;  %v225_v11 = vrot.slane %v185_v53, %v2530_v60  ;;  %vm52_vm11 = vcmp.ge.f32.partialorder %v2507_v44, %v2487_v35  ;;  %s2398_s15 = smov [#allocation7]  }
  0x1d   :  { %v47_v39 = vfloor.f32 %v45_v37  ;;  %vm299_vm14 = vcmask 130048   ;;  %s1907_s16 = sshll.u32 %s2398_s15, 4  ;;  %s1908_s16 = int_to_ptr.vmem [resolvable:$true] %s1907_s16 }
  0x1e   :  { %v60_v47 = vmul.f32 8.0, %v46_v46  ;;  %vm50_vm10 = vcmp.eq.f32.partialorder %v46_v46, %v49_v38  ;;  %p2355_p9 = scmp.lt.s32.totalorder %s1908_s16, %s1908_s16 }
  0x1f   :  { %vm51_vm1 = vcmp.eq.f32.partialorder %v47_v39, %v49_v38  ;;  %v61_v48 = vmul.f32 8.0, %v47_v39  ;;  %vm54_vm12 = vmand %vm50_vm10, %vm52_vm11 }
  0x20   :  { %vm2496_vm3 = vmand %vm51_vm1, %vm53_vm2  ;;  %v62_v49 = vsub.f32 %v2507_v44, %v60_v47  ;;  %vm2383_vm1 = vmmov 0   ;;  %vm296_vm2 = vcmask 31744  }
  0x21   :  { %v63_v52 = vsub.f32 %v40_v34, %v61_v48  ;;  %2026 = vmatprep.mubr.msk.bf16.mxu1 %vm2383_vm1, %v2380_v31 }
  0x22   :  { %vm76_vm4 = vcmp.ge.f32.partialorder %v62_v49, 3.0  ;;  %vm70_vm5 = vcmp.ge.f32.partialorder %v62_v49, 2.0  ;;  %vm64_vm7 = vcmp.ge.f32.partialorder %v62_v49, 1.0 }
  0x23   :  { %vm77_vm6 = vcmp.ge.f32.partialorder %v63_v52, 3.0  ;;  %v2536_v63 = vsel %vm76_vm4, 1.0, %v2380_v31  ;;  %v2542_v2 = vsel %vm70_vm5, 1.0, %v2380_v31  ;;  %vm71_vm8 = vcmp.ge.f32.partialorder %v63_v52, 2.0  ;;  %vm2612_vm4 = vmpackc.low %vm296_vm2, %vm296_vm2 }
  0x24   :  { %vm65_vm9 = vcmp.ge.f32.partialorder %v63_v52, 1.0  ;;  %v2547_v6 = vsel %vm77_vm6, 1.0, %v2380_v31  ;;  %v202_v10 = vmul.f32 %v2536_v63, %v201_v59  ;;  %vm754_vm5 = vcmask 392448  }
  0x25   :  { %vm854_vm6 = vcmask 523648  }
  0x4b   :  { %s2128_s27 = spop %2127 }
  0x8d   :  { %v254_v50 = vpop.permute.xlu1 %253 }
  0xa4   :  { %v93_v16 = vpop.xlane.xlu0 %92 }
  0xa5   :  { %v98_v17 = vmul.f32 0.03125, %v93_v16  ;;  %v2554_v16 = vsel %vm64_vm7, 1.0, %v2380_v31  ;;  %vm885_vm7 = vcmask 523264  }
  0xa7   :  { %v100_v18 = vadd.f32 1e-05, %v98_v17 }
  0xa8   :  { %v96_v19 = vpop.xlane.xlu0 %95 }
  0xa9   :  { %2226 = vrsqrt.f32 %v100_v18  ;;  %v99_v20 = vmul.f32 0.03125, %v96_v19  ;;  %v2557_v18 = vsel %vm71_vm8, 1.0, %v2380_v31  ;;  %v214_v19 = vmul.f32 %v2542_v2, %v213_v3 }
  0xab   :  { %v101_v21 = vadd.f32 1e-05, %v99_v20  ;;  %v2561_v20 = vsel %vm65_vm9, 1.0, %v2380_v31 }
  0xac   :  { %v227_v37 = vmul.f32 %v2561_v20, %v225_v11 }
  0xad   :  { %2228 = vrsqrt.f32 %v101_v21 }
  0xb3   :  { %v2227_v23 = vpop.eup %2226 }
  0xb4   :  { %v104_v24 = vmul.f32 %v2227_v23, %v83_v0  ;;  %v203_v23 = vmul.f32 %v2547_v6, %v201_v59 }
  0xb6   :  { %v110_v28 = vmul.f32 %v109_v25, %v104_v24 }
  0xb7   :  { %v2229_v26 = vpop.eup %2228 }
  0xb8   :  { %v105_v27 = vmul.f32 %v2229_v26, %v84_v1 }
  0xba   :  { %v111_v29 = vmul.f32 %v109_v25, %v105_v27 }
  0xbc   :  { %v112_v30 = vpack.c.bf16 %v111_v29, %v110_v28  ;;  %v226_v29 = vmul.f32 %v2554_v16, %v225_v11 }
  0xbe   :  { %1931 = vmatmul.mubr.msk.bf16.vlgmr.msra.gmra.mrb[0].mxu0 %vm90_vm0, %v112_v30  ;;  %v215_v30 = vmul.f32 %v2557_v18, %v213_v3 }
 0x191   :  { %v2519_v54 = vpop.f32.mrb[0].mxu0 }
 0x192   :  { %v2525_v56 = vadd.f32 %v254_v50, %v2519_v54  ;;  %v176_v57 = vpop.f32.mrb[1].mxu0 }
 0x193   :  { %183 = vst [vmem:[#allocation3 + $0x3] sm:$0xff] %v176_v57  ;;  %v2532_v61 = vpop.f32.mrb[2].mxu0  ;;  %v190_v7 = vmul.f32 %v189_v58, %v176_v57 }
 0x194   :  { %v258_v62 = vand.u32 2147483647, %v2525_v56  ;;  %v2539_v0 = vadd.f32 %v254_v50, %v2532_v61  ;;  %v180_v1 = vpop.f32.mrb[3].mxu0  ;;  %v284_v35 = vmax.f32 %v2525_v56, 0.0 }
 0x195   :  { %184 = vst [vmem:[#allocation3 + $0xb] sm:$0xff] %v180_v1  ;;  %v191_v21 = vmul.f32 %v189_v58, %v180_v1  ;;  %v196_v27 = vadd.f32 %v195_v8, %v190_v7 }
 0x196   :  { %v260_v4 = vsub.f32 0.0, %v258_v62  ;;  %v259_v5 = vand.u32 2147483647, %v2539_v0 }
 0x197   :  { %v197_v48 = vadd.f32 %v195_v8, %v191_v21 }
 0x198   :  { %v262_v15 = vmul.f32 1.442695, %v260_v4  ;;  %v261_v17 = vsub.f32 0.0, %v259_v5 }
 0x19a   :  { %2230 = vpow2.f32 %v262_v15  ;;  %v204_v24 = vld [vmem:[#allocation3] sm:$0xff]  ;;  %v264_v26 = vmul.f32 1.442695, %v261_v17 }
 0x19b   :  { %v216_v25 = vld [vmem:[#allocation3 + $0x1] sm:$0xff]  ;;  %v206_v28 = vmul.f32 %v204_v24, %v202_v10 }
 0x19c   :  { %v228_v32 = vld [vmem:[#allocation3 + $0x2] sm:$0xff]  ;;  %2232 = vpow2.f32 %v264_v26  ;;  %v218_v47 = vmul.f32 %v216_v25, %v214_v19  ;;  %v229_v50 = vld [vmem:[#allocation3 + $0xa] sm:$0xff] }
 0x19d   :  { %v205_v33 = vld [vmem:[#allocation3 + $0x8] sm:$0xff]  ;;  %v208_v39 = vadd.f32 %v206_v28, %v196_v27  ;;  %v230_v53 = vmul.f32 %v228_v32, %v226_v29  ;;  %v231_v1 = vmul.f32 %v229_v50, %v227_v37  ;;  %v2574_v27 = vsel %vm54_vm12, 1.0, %v2380_v31 }
 0x19e   :  { %v217_v34 = vld [vmem:[#allocation3 + $0x9] sm:$0xff]  ;;  %v207_v49 = vmul.f32 %v205_v33, %v203_v23  ;;  %2021 = vmatprep.mubr.msk.f32.mxu0 %vm299_vm14, %v2574_v27 }
 0x19f   :  { %v220_v52 = vadd.f32 %v218_v47, %v208_v39  ;;  %v219_v58 = vmul.f32 %v217_v34, %v215_v30  ;;  %v285_v34 = vmax.f32 %v2539_v0, 0.0 }
 0x1a0   :  { %v209_v57 = vadd.f32 %v207_v49, %v197_v48 }
 0x1a1   :  { %v232_v59 = vadd.f32 %v230_v53, %v220_v52 }
 0x1a2   :  { %v221_v62 = vadd.f32 %v219_v58, %v209_v57  ;;  %v2386_v57 = vmov 66  }
 0x1a3   :  { %v234_v4 = vsub.f32 0.0, %v232_v59 }
 0x1a4   :  { %v233_v3 = vadd.f32 %v231_v1, %v221_v62  ;;  %v2231_v5 = vpop.eup %2230 }
 0x1a5   :  { %v266_v7 = vadd.f32 1.0, %v2231_v5  ;;  %v236_v10 = vmul.f32 1.442695, %v234_v4  ;;  %v269_v19 = vmul.f32 -0.5, %v2231_v5  ;;  %v272_v24 = vand.u32 2147483647, %v2231_v5 }
 0x1a6   :  { %v2233_v15 = vpop.eup %2232  ;;  %v235_v17 = vsub.f32 0.0, %v233_v3 }
 0x1a7   :  { %2234 = vlog2.f32 %v266_v7  ;;  %v275_v11 = vadd.f32 1.0, %v2233_v15  ;;  %v278_v21 = vmul.f32 -0.5, %v2233_v15  ;;  %v270_v23 = vadd.f32 1.0, %v269_v19 }
 0x1a8   :  { %2236 = vpow2.f32 %v236_v10  ;;  %v238_v8 = vmul.f32 1.442695, %v235_v17  ;;  %v281_v28 = vand.u32 2147483647, %v2233_v15  ;;  %vm273_vm13 = vcmp.lt.f32.partialorder %v272_v24, 0.0004427343 }
 0x1a9   :  { %2238 = vlog2.f32 %v275_v11  ;;  %v279_v25 = vadd.f32 1.0, %v278_v21  ;;  %v271_v32 = vmul.f32 %v2231_v5, %v270_v23 }
 0x1aa   :  { %2240 = vpow2.f32 %v238_v8  ;;  %vm282_vm15 = vcmp.lt.f32.partialorder %v281_v28, 0.0004427343 }
 0x1ab   :  { %v280_v33 = vmul.f32 %v2233_v15, %v279_v25 }
 0x1b1   :  { %v2235_v26 = vpop.eup %2234 }
 0x1b2   :  { %v2237_v29 = vpop.eup %2236  ;;  %v268_v30 = vmul.f32 0.6931472, %v2235_v26  ;;  %v2389_v26 = vmov 1  }
 0x1b3   :  { %v2239_v36 = vpop.eup %2238  ;;  %v240_v45 = vadd.f32 1.0, %v2237_v29 }
 0x1b4   :  { %v2241_v38 = vpop.eup %2240  ;;  %v274_v46 = vsel %vm273_vm13, %v271_v32, %v268_v30  ;;  %v277_v44 = vmul.f32 0.6931472, %v2239_v36 }
 0x1b5   :  { %2242 = vrcp.f32 %v240_v45  ;;  %v241_v37 = vadd.f32 1.0, %v2241_v38  ;;  %v2580_v47 = vadd.f32 %v284_v35, %v274_v46  ;;  %v2390_v38 = vmov 3  }
 0x1b6   :  { %v283_v39 = vsel %vm282_vm15, %v280_v33, %v277_v44  ;;  %v2391_v46 = vmov 2  }
 0x1b7   :  { %v2582_v48 = vadd.f32 %v285_v34, %v283_v39  ;;  %2244 = vrcp.f32 %v241_v37  ;;  %v2392_v37 = vmov 64  }
 0x1b9   :  { %v2168_v49 = vpack.i.bf16 %v2582_v48, %v2580_v47 }
 0x1bb   :  { %2169 = vrot.lane.b32.xlu1 %v2168_v49, %s2377_s28 }
 0x1bf   :  { %v2243_v56 = vpop.eup %2242 }
 0x1c0   :  { %v2589_v52 = vmul.f32 %v2243_v56, %v232_v59 }
 0x1c1   :  { %v2245_v50 = vpop.eup %2244 }
 0x1c2   :  { %v2591_v0 = vmul.f32 %v2245_v50, %v233_v3  ;;  %v2621_v3 = vsel %vm2496_vm3, 1.0, %v2380_v31  ;;  %vm654_vm3 = vcmask 261248  }
 0x1c4   :  { %v413_v53 = vpack.c.bf16 %v2591_v0, %v2589_v52 }
 0x1c6   :  { %415 = vrot.lane.b32.xlu1 %v413_v53, %s2384_s20  ;;  %417 = vrot.lane.b32.xlu0 %v413_v53, %s2377_s28 }
 0x1ca   :  { %587 = vperm.xlu1 %2173, %v2580_v47   ;;  %787 = vperm.xlu0 %2175, %v2580_v47  }
 0x1ce   :  { %591 = vperm.xlu1 %2173, %v2582_v48   ;;  %2177 = vset.pattern.permute.xlu0 %v2379_v9 }
 0x1cf   :  { %773 = vrot.lane.b32.xlu0 %v2503_v43, %s2387_s22 }
 0x1d2   :  { %573 = vrot.lane.b32.xlu1 %v2503_v43, %s2385_s21 }
 0x1d3   :  { %2174 = vset.pattern.permute.xlu1 %v2386_v57 }
 0x1d6   :  { %687 = vperm.xlu1 %2174, %v2580_v47  }
 0x1da   :  { %691 = vperm.xlu1 %2174, %v2582_v48  }
 0x1de   :  { %2176 = vset.pattern.permute.xlu1 %v2381_v41 }
 0x1df   :  { %791 = vperm.xlu1 %2176, %v2582_v48  }
 0x1e3   :  { %673 = vrot.lane.b32.xlu1 %v2503_v43, %s2388_s23 }
 0x1e4   :  { %2178 = vset.pattern.permute.xlu1 %v2389_v26 }
 0x22d   :  { %v2170_v58 = vpop.permute.xlu1 %2169 }
 0x22e   :  { %v2172_v59 = vunpack.i.h.bf16 %v2170_v58  ;;  %v2171_v62 = vunpack.i.l.bf16 %v2170_v58 }
 0x230   :  { %v2115_v4 = vpack.c.bf16 %v2172_v59, %v2171_v62 }
 0x232   :  { %2117 = vmatprep.subr.msk.bf16.mxu0 %vm2612_vm4, %v2115_v4 }
 0x233   :  { %2120 = vmatpush3.bf16.msk.msra.mxu0 %vm2612_vm4, %v2115_v4 }
 0x234   :  { %2030 = vmatprep.subr.bf16.mxu0 %v2380_v31 }
 0x236   :  { %2022 = vmatmul.mubr.msk.f32.vlgmr.msra.gmra.mrb[4].mxu0 %vm299_vm14, %v2621_v3 }
 0x237   :  { %2032 = vmatprep.mubr.msk.bf16.mxu0 %vm2383_vm1, %v2380_v31 }
 0x238   :  { %v418_v43 = vpop.permute.xlu0 %417  ;;  %v416_v40 = vpop.permute.xlu1 %415 }
 0x239   :  { %v423_v5 = vsel %vm299_vm14, %v418_v43, 0 }
 0x23a   :  { %2025 = vmatpush3.bf16.xpose.msra.mxu1 %v423_v5 }
 0x23b   :  { %2036 = vmatprep.subr.bf16.mxu1 %v2380_v31 }
 0x241   :  { %2027 = vmatmul.mubr.msk.bf16.vlgmr.msra.gmra.mrb[0].mxu1 %vm299_vm14, %v416_v40 }
 0x242   :  { %2038 = vmatprep.mubr.msk.bf16.mxu1 %vm2383_vm1, %v2380_v31 }
 0x249   :  { %v588_v7 = vpop.permute.xlu1 %587  ;;  %v788_v28 = vpop.permute.xlu0 %787 }
 0x24a   :  { %v594_v15 = vmul.f32 %v588_v7, %v2589_v52  ;;  %v794_v49 = vmul.f32 %v788_v28, %v2589_v52 }
 0x24d   :  { %v592_v10 = vpop.permute.xlu1 %591  ;;  %v774_v32 = vpop.permute.xlu0 %773 }
 0x24e   :  { %v595_v17 = vmul.f32 %v592_v10, %v2591_v0 }
 0x250   :  { %v597_v11 = vpack.c.bf16 %v595_v17, %v594_v15 }
 0x251   :  { %v574_v8 = vpop.permute.xlu1 %573 }
 0x252   :  { %2129 = vpush %v574_v8 }
 0x255   :  { %v688_v19 = vpop.permute.xlu1 %687 }
 0x256   :  { %v694_v23 = vmul.f32 %v688_v19, %v2589_v52 }
 0x259   :  { %v692_v21 = vpop.permute.xlu1 %691 }
 0x25a   :  { %v695_v24 = vmul.f32 %v692_v21, %v2591_v0  ;;  %v489_v21 = vstv %s2128_s27 }
 0x25c   :  { %v697_v25 = vpack.c.bf16 %v695_v24, %v694_v23 }
 0x25e   :  { %v792_v29 = vpop.permute.xlu1 %791 }
 0x25f   :  { %v795_v39 = vmul.f32 %v792_v29, %v2591_v0 }
 0x261   :  { %v797_v56 = vpack.c.bf16 %v795_v39, %v794_v49 }
 0x262   :  { %v674_v30 = vpop.permute.xlu1 %673 }
 0x263   :  { %2131 = vpush %v674_v30 }
 0x264   :  { %2133 = vpush %v774_v32 }
 0x283   :  { %s2130_s29 = spop %2129 }
 0x284   :  { %v576_v23 = vstv %s2130_s29 }
 0x294   :  { %s2664_s30 = spop %2131 }
 0x295   :  { %v676_v24 = vstv %s2664_s30  ;;  %s2134_s6 = spop %2133 }
 0x309   :  { %v2023_v36 = vpop.f32.mrb[4].mxu0 }
 0x30a   :  { %v372_v45 = vpop.f32.mrb[5].mxu0  ;;  %562 = vperm.xlu1 %2178, %v2023_v36   ;;  %475 = vperm.xlu0 %2177, %v2023_v36  }
 0x30e   :  { %2179 = vset.pattern.permute.xlu1 %v2379_v9  ;;  %2182 = vset.pattern.permute.xlu0 %v2390_v38 }
 0x30f   :  { %470 = vperm.xlu1 %2179, %v372_v45   ;;  %762 = vperm.xlu0 %2182, %v2023_v36  }
 0x313   :  { %2180 = vset.pattern.permute.xlu1 %v2389_v26  ;;  %2183 = vset.pattern.permute.xlu0 %v2391_v46 }
 0x314   :  { %v2644_v35 = vpop.f32.mrb[0].mxu1  ;;  %558 = vperm.xlu1 %2180, %v372_v45   ;;  %658 = vperm.xlu0 %2183, %v372_v45  }
 0x315   :  { %v2028_v44 = vpop.f32.mrb[1].mxu1 }
 0x316   :  { %v2646_v33 = vpop.f32.mrb[2].mxu1 }
 0x317   :  { %v2029_v34 = vpop.f32.mrb[3].mxu1 }
 0x318   :  { %2181 = vset.pattern.permute.xlu1 %v2391_v46 }
 0x319   :  { %662 = vperm.xlu1 %2181, %v2023_v36  }
 0x31d   :  { %2184 = vset.pattern.permute.xlu1 %v2390_v38 }
 0x31e   :  { %758 = vperm.xlu1 %2184, %v372_v45  }
 0x322   :  { %2185 = vset.pattern.permute.xlu1 %v2392_v37 }
 0x323   :  { %500 = vperm.xlu1 %2185, %v2580_v47  }
 0x327   :  { %504 = vperm.xlu1 %2185, %v2582_v48  }
 0x32b   :  { %599 = vrot.lane.b32.xlu1 %v597_v11, %s2393_s24 }
 0x32c   :  { %2192 = vset.pattern.permute.xlu1 %v2382_v42 }
 0x32f   :  { %699 = vrot.lane.b32.xlu1 %v697_v25, %s2394_s25 }
 0x332   :  { %381 = vxpose.xlu0.b32.start [1/2] (short) (narrow) %v372_v45, 8 }
 0x333   :  { %799 = vrot.lane.b32.xlu1 %v797_v56, %s2395_s26 }
 0x336   :  { %382 = vxpose.xlu0.b32.end [2/2] (short) (narrow) %v2023_v36, 8 }
 0x35f   :  { %2191 = vset.pattern.permute.xlu0 %v2382_v42 }
 0x389   :  { %v563_v47 = vpop.permute.xlu1 %562  ;;  %v476_v59 = vpop.permute.xlu0 %475 }
 0x38e   :  { %v471_v48 = vpop.permute.xlu1 %470  ;;  %v763_v40 = vpop.permute.xlu0 %762 }
 0x393   :  { %v559_v50 = vpop.permute.xlu1 %558  ;;  %v659_v42 = vpop.permute.xlu0 %658 }
 0x398   :  { %v663_v53 = vpop.permute.xlu1 %662 }
 0x39d   :  { %v759_v58 = vpop.permute.xlu1 %758 }
 0x3a2   :  { %v501_v62 = vpop.permute.xlu1 %500 }
 0x3a3   :  { %v507_v43 = vmul.f32 %v501_v62, %v2589_v52 }
 0x3a6   :  { %v505_v4 = vpop.permute.xlu1 %504 }
 0x3a7   :  { %v508_v5 = vmul.f32 %v505_v4, %v2591_v0 }
 0x3a9   :  { %v510_v7 = vpack.c.bf16 %v508_v5, %v507_v43  ;;  %v776_v43 = vstv %s2134_s6 }
 0x3aa   :  { %v600_v10 = vpop.permute.xlu1 %599 }
 0x3ab   :  { %2031 = vmatpush3.bf16.msra.mxu0 %v510_v7  ;;  %2037 = vmatpush3.bf16.msra.mxu1 %v600_v10 }
 0x3ac   :  { %2042 = vmatprep.subr.bf16.mxu0 %v2380_v31  ;;  %2048 = vmatprep.subr.bf16.mxu1 %v2380_v31 }
 0x3b2   :  { %v397_v15 = vpop.trf.xlu0 }
 0x3b3   :  { %v481_v17 = vrot.slane %v397_v15, %v2479_v22  ;;  %v568_v11 = vrot.slane %v397_v15, %v2522_v55  ;;  %v668_v8 = vrot.slane %v397_v15, %v2530_v60  ;;  %v768_v19 = vrot.slane %v397_v15, %v2517_v51 }
 0x3b5   :  { %v482_v25 = vsub.f32 %v471_v48, %v481_v17  ;;  %v483_v28 = vsub.f32 %v476_v59, %v481_v17  ;;  %v569_v29 = vsub.f32 %v559_v50, %v568_v11  ;;  %v570_v30 = vsub.f32 %v563_v47, %v568_v11 }
 0x3b6   :  { %v669_v32 = vsub.f32 %v659_v42, %v668_v8  ;;  %v670_v36 = vsub.f32 %v663_v53, %v668_v8  ;;  %v769_v45 = vsub.f32 %v759_v58, %v768_v19  ;;  %v770_v44 = vsub.f32 %v763_v40, %v768_v19 }
 0x3b7   :  { %v484_v34 = vmul.f32 %v2574_v27, %v482_v25  ;;  %v485_v39 = vmul.f32 %v2621_v3, %v483_v28  ;;  %v571_v49 = vmul.f32 %v2574_v27, %v569_v29  ;;  %v572_v56 = vmul.f32 %v2621_v3, %v570_v30 }
 0x3b8   :  { %v671_v62 = vmul.f32 %v2574_v27, %v669_v32  ;;  %v672_v48 = vmul.f32 %v2621_v3, %v670_v36  ;;  %v771_v50 = vmul.f32 %v2574_v27, %v769_v45  ;;  %v772_v47 = vmul.f32 %v2621_v3, %v770_v44  ;;  %v700_v36 = vpop.permute.xlu1 %699 }
 0x3b9   :  { %v491_v53 = vmul.f32 %v489_v21, %v484_v34  ;;  %v492_v58 = vmul.f32 %v489_v21, %v485_v39  ;;  %v578_v59 = vmul.f32 %v576_v23, %v571_v49  ;;  %v579_v4 = vmul.f32 %v576_v23, %v572_v56 }
 0x3ba   :  { %v678_v5 = vmul.f32 %v676_v24, %v671_v62  ;;  %v679_v40 = vmul.f32 %v676_v24, %v672_v48  ;;  %v778_v15 = vmul.f32 %v776_v43, %v771_v50  ;;  %v779_v11 = vmul.f32 %v776_v43, %v772_v47 }
 0x3bb   :  { %v493_v7 = vmul.f32 1.442695, %v491_v53  ;;  %v495_v10 = vmul.f32 1.442695, %v492_v58  ;;  %v580_v42 = vmul.f32 1.442695, %v578_v59  ;;  %v466_v21 = vmul.f32 %v2574_v27, %v2644_v35 }
 0x3bc   :  { %v582_v17 = vmul.f32 1.442695, %v579_v4  ;;  %v680_v8 = vmul.f32 1.442695, %v678_v5  ;;  %v682_v19 = vmul.f32 1.442695, %v679_v40  ;;  %v467_v24 = vmul.f32 %v2621_v3, %v2646_v33  ;;  %v800_v58 = vpop.permute.xlu1 %799 }
 0x3bd   :  { %2246 = vpow2.f32 %v493_v7  ;;  %v780_v25 = vmul.f32 1.442695, %v778_v15  ;;  %v782_v28 = vmul.f32 1.442695, %v779_v11 }
 0x3be   :  { %2248 = vpow2.f32 %v495_v10 }
 0x3bf   :  { %2250 = vpow2.f32 %v580_v42 }
 0x3c0   :  { %2252 = vpow2.f32 %v582_v17 }
 0x3c1   :  { %2254 = vpow2.f32 %v680_v8 }
 0x3c2   :  { %2256 = vpow2.f32 %v682_v19 }
 0x3c3   :  { %2258 = vpow2.f32 %v780_v25 }
 0x3c4   :  { %2260 = vpow2.f32 %v782_v28 }
 0x3c7   :  { %v2247_v23 = vpop.eup %2246 }
 0x3c8   :  { %v2249_v29 = vpop.eup %2248  ;;  %v497_v30 = vmul.f32 %v2247_v23, %v466_v21 }
 0x3c9   :  { %v2251_v32 = vpop.eup %2250  ;;  %v498_v45 = vmul.f32 %v2249_v29, %v467_v24 }
 0x3ca   :  { %v2253_v44 = vpop.eup %2252  ;;  %v584_v34 = vmul.f32 %v2251_v32, %v466_v21  ;;  %v868_v32 = vsub.f32 0.0, %v2532_v61 }
 0x3cb   :  { %v2255_v39 = vpop.eup %2254  ;;  %v509_v49 = vpack.c.bf16 %v498_v45, %v497_v30  ;;  %v585_v56 = vmul.f32 %v2253_v44, %v467_v24  ;;  %v867_v30 = vsub.f32 0.0, %v2519_v54 }
 0x3cc   :  { %v2257_v62 = vpop.eup %2256  ;;  %v684_v48 = vmul.f32 %v2255_v39, %v466_v21  ;;  %v871_v45 = vmul.f32 1.442695, %v868_v32 }
 0x3cd   :  { %v2259_v50 = vpop.eup %2258  ;;  %2033 = vmatmul.mubr.msk.bf16.vlgmr.msra.gmra.mrb[8].mxu0 %vm299_vm14, %v509_v49  ;;  %v596_v35 = vpack.c.bf16 %v585_v56, %v584_v34  ;;  %v685_v47 = vmul.f32 %v2257_v62, %v467_v24 }
 0x3ce   :  { %v2261_v53 = vpop.eup %2260  ;;  %2043 = vmatpush3.bf16.msra.mxu0 %v700_v36  ;;  %2044 = vmatprep.mubr.msk.bf16.mxu0 %vm2383_vm1, %v2380_v31  ;;  %v784_v33 = vmul.f32 %v2259_v50, %v466_v21  ;;  %v869_v36 = vmul.f32 1.442695, %v867_v30 }
 0x3cf   :  { %2039 = vmatmul.mubr.msk.bf16.vlgmr.msra.gmra.mrb[4].mxu1 %vm299_vm14, %v596_v35  ;;  %v696_v59 = vpack.c.bf16 %v685_v47, %v684_v48  ;;  %v785_v4 = vmul.f32 %v2261_v53, %v467_v24  ;;  %2054 = vmatprep.subr.bf16.mxu0 %v2380_v31  ;;  %v862_v53 = vrot.slane %v2472_v14, %v2530_v60 }
 0x3d0   :  { %2049 = vmatpush3.bf16.msra.mxu1 %v800_v58  ;;  %2050 = vmatprep.mubr.msk.bf16.mxu1 %vm2383_vm1, %v2380_v31  ;;  %2262 = vpow2.f32 %v869_v36 }
 0x3d1   :  { %v796_v43 = vpack.c.bf16 %v785_v4, %v784_v33  ;;  %2264 = vpow2.f32 %v871_v45  ;;  %v904_v45 = vrot.slane %v2472_v14, %v2522_v55  ;;  %v2327_v14 = vld [vmem:[%s2975_s0 + $0x8] sm:$0xff] }
 0x3d5   :  { %2045 = vmatmul.mubr.msk.bf16.vlgmr.msra.gmra.mrb[12].mxu0 %vm299_vm14, %v696_v59  ;;  %v864_v59 = vmul.f32 %v862_v53, %v2591_v0 }
 0x3d6   :  { %2062 = vmatprep.mubr.msk.bf16.mxu0 %vm2383_vm1, %v2380_v31 }
 0x3d7   :  { %2051 = vmatmul.mubr.msk.bf16.vlgmr.msra.gmra.mrb[8].mxu1 %vm299_vm14, %v796_v43  ;;  %v863_v43 = vmul.f32 %v862_v53, %v2589_v52  ;;  %v2212_v52 = vld [vmem:[%s2979_s4] sm:$0xff]  }
 0x3d8   :  { %1069 = vmatprep.mubr.bf16.mxu1 %v2379_v9  ;;  %2055 = vmatpush3.bf16.msra.mxu0 %v2212_v52 }
 0x3d9   :  { %2056 = vmatprep.subr.bf16.mxu0 %v2380_v31 }
 0x3da   :  { %v2263_v34 = vpop.eup %2262 }
 0x3db   :  { %v2265_v49 = vpop.eup %2264  ;;  %v873_v56 = vadd.f32 1.0, %v2263_v34 }
 0x3dc   :  { %v874_v62 = vadd.f32 1.0, %v2265_v49 }
 0x3dd   :  { %2266 = vrcp.f32 %v873_v56 }
 0x3de   :  { %2268 = vrcp.f32 %v874_v62 }
 0x3e7   :  { %v2267_v33 = vpop.eup %2266 }
 0x3e8   :  { %v2269_v4 = vpop.eup %2268 }
 0x4a0   :  { %v548_v5 = vpop.f32.mrb[8].mxu0 }
 0x4a1   :  { %555 = vst.msk [vmem:[#allocation2] sm:$0xff] %vm299_vm14, %v548_v5  ;;  %v2034_v40 = vpop.f32.mrb[9].mxu0 }
 0x4a2   :  { %v639_v7 = vpop.f32.mrb[4].mxu1  ;;  %v551_v10 = vpop.f32.mrb[10].mxu0 }
 0x4a3   :  { %648 = vrot.lane.b32.xlu1 %v639_v7, %s2396_s7  ;;  %v2040_v42 = vpop.f32.mrb[5].mxu1  ;;  %556 = vst.msk [vmem:[#allocation2 + $0x8] sm:$0xff] %vm299_vm14, %v551_v10  ;;  %v2035_v15 = vpop.f32.mrb[11].mxu0  ;;  %v879_v7 = vmul.f32 %v2267_v33, %v2519_v54  ;;  %v880_v10 = vmul.f32 %v2269_v4, %v2532_v61  ;;  %v2213_v54 = vld [vmem:[%s2979_s4 + $0x8] sm:$0xff]   ;;  %v2214_v61 = vld [vmem:[%s2979_s4 + $0x10] sm:$0xff]  }
 0x4a4   :  { %v642_v17 = vpop.f32.mrb[6].mxu1  ;;  %2057 = vmatpush3.bf16.msra.mxu0 %v2213_v54 }
 0x4a5   :  { %v2041_v11 = vpop.f32.mrb[7].mxu1  ;;  %2058 = vmatprep.subr.bf16.mxu0 %v2380_v31 }
 0x4a7   :  { %650 = vrot.lane.b32.xlu1 %v642_v17, %s2396_s7 }
 0x4a8   :  { %v739_v8 = vpop.f32.mrb[12].mxu0  ;;  %2059 = vmatpush3.bf16.msra.mxu0 %v2214_v61 }
 0x4a9   :  { %v2046_v19 = vpop.f32.mrb[13].mxu0  ;;  %2060 = vmatprep.subr.bf16.mxu0 %v2380_v31 }
 0x4aa   :  { %v839_v25 = vpop.f32.mrb[8].mxu1  ;;  %v742_v28 = vpop.f32.mrb[14].mxu0 }
 0x4ab   :  { %v2052_v21 = vpop.f32.mrb[9].mxu1  ;;  %748 = vrot.lane.b32.xlu1 %v739_v8, %s2397_s8  ;;  %v2047_v23 = vpop.f32.mrb[15].mxu0 }
 0x4ac   :  { %v842_v24 = vpop.f32.mrb[10].mxu1 }
 0x4ad   :  { %850 = vrot.lane.b32.xlu0 %v842_v24, %s2384_s20  ;;  %v2053_v29 = vpop.f32.mrb[11].mxu1 }
 0x4af   :  { %750 = vrot.lane.b32.xlu1 %v742_v28, %s2397_s8 }
 0x4b3   :  { %848 = vrot.lane.b32.xlu1 %v839_v25, %s2384_s20  ;;  %v2215_v25 = vld [vmem:[%s2979_s4 + $0x18] sm:$0xff]  }
 0x4b4   :  { %2061 = vmatpush3.bf16.msra.mxu0 %v2215_v25 }
 0x4b5   :  { %2073 = vmatprep.subr.bf16.mxu0 %v2380_v31 }
 0x515   :  { %v649_v44 = vpop.permute.xlu1 %648 }
 0x516   :  { %655 = vst.msk [vmem:[#allocation2] sm:$0xff] %vm654_vm3, %v649_v44 }
 0x519   :  { %v651_v39 = vpop.permute.xlu1 %650 }
 0x51a   :  { %656 = vst.msk [vmem:[#allocation2 + $0x8] sm:$0xff] %vm654_vm3, %v651_v39 }
 0x51d   :  { %v749_v48 = vpop.permute.xlu1 %748 }
 0x51e   :  { %755 = vst.msk [vmem:[#allocation2] sm:$0xff] %vm754_vm5, %v749_v48  ;;  %v2326_v48 = vld [vmem:[%s2975_s0] sm:$0xff] }
 0x51f   :  { %v851_v35 = vpop.permute.xlu0 %850 }
 0x521   :  { %v751_v50 = vpop.permute.xlu1 %750 }
 0x522   :  { %756 = vst.msk [vmem:[#allocation2 + $0x8] sm:$0xff] %vm754_vm5, %v751_v50 }
 0x523   :  { %856 = vst.msk [vmem:[#allocation2 + $0x8] sm:$0xff] %vm854_vm6, %v851_v35 }
 0x525   :  { %v849_v47 = vpop.permute.xlu1 %848 }
 0x526   :  { %855 = vst.msk [vmem:[#allocation2] sm:$0xff] %vm854_vm6, %v849_v47 }
 0x52a   :  { %v858_v58 = vld [vmem:[#allocation2 + $0x8] sm:$0xff] }
 0x52b   :  { %v866_v5 = vadd.f32 %v864_v59, %v858_v58 }
 0x52d   :  { %v857_v40 = vld [vmem:[#allocation2] sm:$0xff]  ;;  %v882_v17 = vmul.f32 %v880_v10, %v866_v5  ;;  %v2219_v10 = vld [vmem:[%s2976_s1 + $0x30] ss:$8 sps:$4 sm:$0xff]  }
 0x52e   :  { %v865_v42 = vadd.f32 %v863_v43, %v857_v40  ;;  %v2216_v5 = vld [vmem:[%s2976_s1 + $0x20] ss:$8 sps:$4 sm:$0xff]   ;;  %v2218_v40 = vld [vmem:[%s2976_s1 + $0x24] ss:$8 sps:$4 sm:$0xff]  }
 0x52f   :  { %v884_v19 = vmul.f32 %v882_v17, %v882_v17  ;;  %1037 = vmatprep.subr.bf16.mxu1 %v2218_v40 }
 0x530   :  { %v881_v15 = vmul.f32 %v879_v7, %v865_v42  ;;  %v2221_v7 = vld [vmem:[%s2976_s1 + $0x34] ss:$8 sps:$4 sm:$0xff]   ;;  %1038 = vmatpush1.bf16.msra.mxu1 %v2216_v5  ;;  %v2771_v42 = vld [vmem:[%s2978_s3 + $0x8] sm:$0xff] }
 0x531   :  { %v889_v0 = vsel %vm885_vm7, %v884_v19, 0.0  ;;  %1039 = vmatprep.subr.bf16.mxu1 %v2221_v7  ;;  %v1005_v25 = vrot.slane %v2771_v42, %v2479_v22 }
 0x532   :  { %v883_v11 = vmul.f32 %v881_v15, %v881_v15 }
 0x534   :  { %v886_v8 = vsel %vm885_vm7, %v883_v11, 0.0  ;;  %1040 = vmatpush1.bf16.msra.mxu1 %v2219_v10 }
 0x535   :  { %887 = vadd.xlane.f32.xlu1 %v886_v8 }
 0x539   :  { %890 = vadd.xlane.f32.xlu1 %v889_v0 }
 0x5c2   :  { %v888_v28 = vpop.xlane.xlu1 %887 }
 0x5c3   :  { %v893_v21 = vmul.f32 0.015625, %v888_v28 }
 0x5c5   :  { %v895_v23 = vadd.f32 1e-05, %v893_v21 }
 0x5c6   :  { %v891_v24 = vpop.xlane.xlu1 %890 }
 0x5c7   :  { %2270 = vrsqrt.f32 %v895_v23  ;;  %v894_v29 = vmul.f32 0.015625, %v891_v24  ;;  %v2785_v24 = vrot.slane %v2771_v42, 4 }
 0x5c9   :  { %v896_v30 = vadd.f32 1e-05, %v894_v29  ;;  %2135 = vpush %v2785_v24 }
 0x5cb   :  { %2272 = vrsqrt.f32 %v896_v30  ;;  %v1083_v30 = vld [vmem:[#allocation4 + $0x4] sm:$0xf] }
 0x5d1   :  { %v2271_v32 = vpop.eup %2270 }
 0x5d2   :  { %v899_v36 = vmul.f32 %v2271_v32, %v881_v15  ;;  %v1149_v15 = vrot.slane %v2771_v42, %v250_v13 }
 0x5d4   :  { %v905_v39 = vmul.f32 %v904_v45, %v899_v36 }
 0x5d5   :  { %v2273_v44 = vpop.eup %2272 }
 0x5d6   :  { %v900_v34 = vmul.f32 %v2273_v44, %v882_v17  ;;  %v1087_v44 = vrot.slane %v1083_v30, %v2517_v51 }
 0x5d8   :  { %v906_v49 = vmul.f32 %v904_v45, %v900_v34  ;;  %v1099_v34 = vrot.slane %v1083_v30, %v2479_v22 }
 0x5da   :  { %v907_v56 = vpack.c.bf16 %v906_v49, %v905_v39  ;;  %v1101_v7 = vmul.f32 %v2547_v6, %v1099_v34 }
 0x5dc   :  { %2063 = vmatmul.mubr.msk.bf16.vlgmr.msra.gmra.mrb[16].mxu0 %vm885_vm7, %v907_v56 }
 0x5dd   :  { %2075 = vmatprep.mubr.msk.bf16.mxu0 %vm2383_vm1, %v2380_v31 }
 0x5fa   :  { %s2136_s1 = spop %2135 }
 0x6af   :  { %v979_v62 = vpop.f32.mrb[16].mxu0 }
 0x6b0   :  { %v2743_v50 = vadd.f32 %v2326_v48, %v979_v62  ;;  %v2064_v35 = vpop.f32.mrb[17].mxu0  ;;  %v1111_v48 = vrot.slane %v1083_v30, %v2522_v55 }
 0x6b1   :  { %v982_v47 = vpop.f32.mrb[18].mxu0 }
 0x6b2   :  { %v2748_v53 = vadd.f32 %v2327_v14, %v982_v47  ;;  %v2065_v33 = vpop.f32.mrb[19].mxu0  ;;  %v986_v58 = vmul.f32 %v2743_v50, %v2743_v50  ;;  %v1112_v5 = vmul.f32 %v2542_v2, %v1111_v48 }
 0x6b3   :  { %v1093_v33 = vrot.slane %v2771_v42, %v2517_v51 }
 0x6b4   :  { %v988_v59 = vsel %vm90_vm0, %v986_v58, 0.0  ;;  %v987_v4 = vmul.f32 %v2748_v53, %v2748_v53  ;;  %v1100_v58 = vmul.f32 %v2536_v63, %v1099_v34 }
 0x6b5   :  { %989 = vadd.xlane.f32.xlu1 %v988_v59  ;;  %v1123_v59 = vrot.slane %v1083_v30, %v2530_v60 }
 0x6b6   :  { %v991_v43 = vsel %vm90_vm0, %v987_v4, 0.0 }
 0x6b7   :  { %992 = vadd.xlane.f32.xlu0 %v991_v43 }
 0x6c6   :  { %1151 = vrot.lane.b32.xlu1 %v1149_v15, %s2377_s28 }
 0x742   :  { %v990_v17 = vpop.xlane.xlu1 %989 }
 0x743   :  { %v994_v11 = vmul.f32 0.03125, %v990_v17 }
 0x744   :  { %v993_v8 = vpop.xlane.xlu0 %992 }
 0x745   :  { %v996_v19 = vadd.f32 1e-05, %v994_v11  ;;  %v995_v0 = vmul.f32 0.03125, %v993_v8 }
 0x746   :  { %v1152_v29 = vpop.permute.xlu1 %1151 }
 0x747   :  { %2274 = vrsqrt.f32 %v996_v19  ;;  %v997_v52 = vadd.f32 1e-05, %v995_v0  ;;  %v1124_v19 = vmul.f32 %v2554_v16, %v1123_v59  ;;  %v1113_v0 = vmul.f32 %v2557_v18, %v1111_v48 }
 0x749   :  { %2276 = vrsqrt.f32 %v997_v52 }
 0x751   :  { %v2275_v54 = vpop.eup %2274 }
 0x752   :  { %v1000_v61 = vmul.f32 %v2275_v54, %v2743_v50 }
 0x753   :  { %v2277_v12 = vpop.eup %2276 }
 0x754   :  { %v1001_v13 = vmul.f32 %v2277_v12, %v2748_v53  ;;  %v1006_v28 = vmul.f32 %v1005_v25, %v1000_v61  ;;  %v1125_v61 = vmul.f32 %v2561_v20, %v1123_v59 }
 0x756   :  { %v1007_v21 = vmul.f32 %v1005_v25, %v1001_v13 }
 0x758   :  { %v1008_v23 = vpack.c.bf16 %v1007_v21, %v1006_v28 }
 0x75a   :  { %1955 = vmatmul.mubr.msk.bf16.vlgmr.msra.gmra.mrb[12].mxu1 %vm90_vm0, %v1008_v23 }
 0x75b   :  { %2070 = vmatprep.mubr.msk.f32.mxu1 %vm299_vm14, %v2574_v27 }
 0x82d   :  { %v2788_v32 = vpop.f32.mrb[12].mxu1 }
 0x82e   :  { %v2791_v36 = vadd.f32 %v1152_v29, %v2788_v32  ;;  %v1073_v45 = vpop.f32.mrb[13].mxu1 }
 0x82f   :  { %1080 = vst [vmem:[#allocation3 + $0x3] sm:$0xff] %v1073_v45  ;;  %v2795_v39 = vpop.f32.mrb[14].mxu1  ;;  %v1088_v14 = vmul.f32 %v1087_v44, %v1073_v45 }
 0x830   :  { %v1156_v49 = vand.u32 2147483647, %v2791_v36  ;;  %v2799_v56 = vadd.f32 %v1152_v29, %v2795_v39  ;;  %v1077_v62 = vpop.f32.mrb[15].mxu1 }
 0x831   :  { %1081 = vst [vmem:[#allocation3 + $0xb] sm:$0xff] %v1077_v62  ;;  %v1089_v40 = vmul.f32 %v1087_v44, %v1077_v62  ;;  %v1094_v11 = vadd.f32 %v1093_v33, %v1088_v14 }
 0x832   :  { %v1158_v35 = vsub.f32 0.0, %v1156_v49  ;;  %v1157_v47 = vand.u32 2147483647, %v2799_v56 }
 0x833   :  { %v1095_v12 = vadd.f32 %v1093_v33, %v1089_v40 }
 0x834   :  { %v1160_v4 = vmul.f32 1.442695, %v1158_v35  ;;  %v1159_v43 = vsub.f32 0.0, %v1157_v47 }
 0x836   :  { %2278 = vpow2.f32 %v1160_v4  ;;  %v1102_v10 = vld [vmem:[#allocation3] sm:$0xff]  ;;  %v1162_v17 = vmul.f32 1.442695, %v1159_v43 }
 0x837   :  { %v1114_v15 = vld [vmem:[#allocation3 + $0x1] sm:$0xff]  ;;  %v1104_v8 = vmul.f32 %v1102_v10, %v1100_v58 }
 0x838   :  { %v1126_v63 = vld [vmem:[#allocation3 + $0x2] sm:$0xff]  ;;  %2280 = vpow2.f32 %v1162_v17  ;;  %v1116_v25 = vmul.f32 %v1114_v15, %v1112_v5  ;;  %v1127_v13 = vld [vmem:[#allocation3 + $0xa] sm:$0xff]  ;;  %v1182_v17 = vmax.f32 %v2791_v36, 0.0 }
 0x839   :  { %v1103_v52 = vld [vmem:[#allocation3 + $0x8] sm:$0xff]  ;;  %v1106_v2 = vadd.f32 %v1104_v8, %v1094_v11  ;;  %v1128_v21 = vmul.f32 %v1126_v63, %v1124_v19  ;;  %v1129_v16 = vmul.f32 %v1127_v13, %v1125_v61 }
 0x83a   :  { %v1115_v54 = vld [vmem:[#allocation3 + $0x9] sm:$0xff]  ;;  %v1105_v6 = vmul.f32 %v1103_v52, %v1101_v7  ;;  %v1183_v52 = vmax.f32 %v2799_v56, 0.0 }
 0x83b   :  { %v1118_v28 = vadd.f32 %v1116_v25, %v1106_v2  ;;  %v1117_v29 = vmul.f32 %v1115_v54, %v1113_v0 }
 0x83c   :  { %v1107_v23 = vadd.f32 %v1105_v6, %v1095_v12 }
 0x83d   :  { %v1130_v30 = vadd.f32 %v1128_v21, %v1118_v28 }
 0x83e   :  { %v1119_v45 = vadd.f32 %v1117_v29, %v1107_v23 }
 0x83f   :  { %v1132_v44 = vsub.f32 0.0, %v1130_v30 }
 0x840   :  { %v1131_v18 = vadd.f32 %v1129_v16, %v1119_v45  ;;  %v2279_v34 = vpop.eup %2278 }
 0x841   :  { %v1164_v49 = vadd.f32 1.0, %v2279_v34  ;;  %v1134_v62 = vmul.f32 1.442695, %v1132_v44  ;;  %v1167_v14 = vmul.f32 -0.5, %v2279_v34  ;;  %v1170_v59 = vand.u32 2147483647, %v2279_v34 }
 0x842   :  { %v2281_v48 = vpop.eup %2280  ;;  %v1133_v35 = vsub.f32 0.0, %v1131_v18 }
 0x843   :  { %2282 = vlog2.f32 %v1164_v49  ;;  %v1173_v20 = vadd.f32 1.0, %v2281_v48  ;;  %v1176_v33 = vmul.f32 -0.5, %v2281_v48  ;;  %v1168_v58 = vadd.f32 1.0, %v1167_v14 }
 0x844   :  { %2284 = vpow2.f32 %v1134_v62  ;;  %v1136_v47 = vmul.f32 1.442695, %v1133_v35  ;;  %v1179_v5 = vand.u32 2147483647, %v2281_v48  ;;  %vm1171_vm8 = vcmp.lt.f32.partialorder %v1170_v59, 0.0004427343 }
 0x845   :  { %2286 = vlog2.f32 %v1173_v20  ;;  %v1177_v4 = vadd.f32 1.0, %v1176_v33  ;;  %v1169_v10 = vmul.f32 %v2279_v34, %v1168_v58 }
 0x846   :  { %2288 = vpow2.f32 %v1136_v47  ;;  %vm1180_vm9 = vcmp.lt.f32.partialorder %v1179_v5, 0.0004427343 }
 0x847   :  { %v1178_v63 = vmul.f32 %v2281_v48, %v1177_v4 }
 0x84d   :  { %v2283_v43 = vpop.eup %2282 }
 0x84e   :  { %v2285_v40 = vpop.eup %2284  ;;  %v1166_v7 = vmul.f32 0.6931472, %v2283_v43 }
 0x84f   :  { %v2287_v15 = vpop.eup %2286  ;;  %v1138_v11 = vadd.f32 1.0, %v2285_v40 }
 0x850   :  { %v2289_v8 = vpop.eup %2288  ;;  %v1172_v19 = vsel %vm1171_vm8, %v1169_v10, %v1166_v7  ;;  %v1175_v0 = vmul.f32 0.6931472, %v2287_v15 }
 0x851   :  { %v1184_v54 = vadd.f32 %v1182_v17, %v1172_v19  ;;  %2290 = vrcp.f32 %v1138_v11  ;;  %v1139_v61 = vadd.f32 1.0, %v2289_v8 }
 0x852   :  { %v1181_v2 = vsel %vm1180_vm9, %v1178_v63, %v1175_v0 }
 0x853   :  { %v2814_v25 = vadd.f32 %v1183_v52, %v1181_v2  ;;  %2292 = vrcp.f32 %v1139_v61  ;;  %1477 = vperm.xlu0 %2191, %v1184_v54  }
 0x855   :  { %v2186_v12 = vpack.i.bf16 %v2814_v25, %v1184_v54 }
 0x857   :  { %2187 = vrot.lane.b32.xlu1 %v2186_v12, %s2377_s28  ;;  %2197 = vset.pattern.permute.xlu0 %v2389_v26 }
 0x85b   :  { %v2291_v36 = vpop.eup %2290 }
 0x85c   :  { %v2819_v13 = vmul.f32 %v2291_v36, %v1130_v30 }
 0x85d   :  { %v2293_v6 = vpop.eup %2292 }
 0x85e   :  { %v2821_v56 = vmul.f32 %v2293_v6, %v1131_v18 }
 0x860   :  { %v1303_v28 = vpack.c.bf16 %v2821_v56, %v2819_v13 }
 0x862   :  { %1307 = vrot.lane.b32.xlu1 %v1303_v28, %s2377_s28 }
 0x866   :  { %1305 = vrot.lane.b32.xlu1 %v1303_v28, %s2384_s20 }
 0x86a   :  { %1481 = vperm.xlu1 %2192, %v2814_v25  }
 0x86e   :  { %1463 = vrot.lane.b32.xlu1 %v2785_v24, %s2385_s21 }
 0x86f   :  { %2193 = vset.pattern.permute.xlu1 %v2386_v57 }
 0x872   :  { %1576 = vperm.xlu1 %2193, %v1184_v54  }
 0x876   :  { %1580 = vperm.xlu1 %2193, %v2814_v25  }
 0x87a   :  { %2194 = vset.pattern.permute.xlu1 %v2381_v41 }
 0x87b   :  { %1675 = vperm.xlu1 %2194, %v1184_v54  }
 0x87f   :  { %1679 = vperm.xlu1 %2194, %v2814_v25  }
 0x883   :  { %1562 = vrot.lane.b32.xlu1 %v2785_v24, %s2388_s23 }
 0x884   :  { %2195 = vset.pattern.permute.xlu1 %v2392_v37 }
 0x887   :  { %1661 = vrot.lane.b32.xlu1 %v2785_v24, %s2387_s22 }
 0x88b   :  { %1390 = vperm.xlu1 %2195, %v1184_v54  }
 0x88f   :  { %2196 = vset.pattern.permute.xlu1 %v2379_v9 }
 0x8c9   :  { %v2188_v57 = vpop.permute.xlu1 %2187 }
 0x8ca   :  { %v2190_v21 = vunpack.i.h.bf16 %v2188_v57  ;;  %v2189_v23 = vunpack.i.l.bf16 %v2188_v57  ;;  %v1379_v57 = vstv %s2136_s1 }
 0x8cc   :  { %v2121_v29 = vpack.c.bf16 %v2190_v21, %v2189_v23 }
 0x8ce   :  { %2123 = vmatprep.subr.msk.bf16.mxu1 %vm2612_vm4, %v2121_v29 }
 0x8cf   :  { %2126 = vmatpush3.bf16.msk.msra.mxu1 %vm2612_vm4, %v2121_v29 }
 0x8d0   :  { %2079 = vmatprep.subr.bf16.mxu1 %v2380_v31 }
 0x8d2   :  { %2071 = vmatmul.mubr.msk.f32.vlgmr.msra.gmra.mrb[16].mxu1 %vm299_vm14, %v2621_v3  ;;  %v1478_v43 = vpop.permute.xlu0 %1477 }
 0x8d3   :  { %2081 = vmatprep.mubr.msk.bf16.mxu1 %vm2383_vm1, %v2380_v31  ;;  %v1484_v40 = vmul.f32 %v1478_v43, %v2819_v13 }
 0x8d4   :  { %v1308_v24 = vpop.permute.xlu1 %1307 }
 0x8d5   :  { %v1313_v30 = vsel %vm299_vm14, %v1308_v24, 0 }
 0x8d6   :  { %2074 = vmatpush3.bf16.xpose.msra.mxu0 %v1313_v30 }
 0x8d7   :  { %2085 = vmatprep.subr.bf16.mxu0 %v2380_v31 }
 0x8d8   :  { %v1306_v45 = vpop.permute.xlu1 %1305 }
 0x8dd   :  { %2076 = vmatmul.mubr.msk.bf16.vlgmr.msra.gmra.mrb[20].mxu0 %vm299_vm14, %v1306_v45 }
 0x8de   :  { %2087 = vmatprep.mubr.msk.bf16.mxu0 %vm2383_vm1, %v2380_v31 }
 0x8e9   :  { %v1482_v1 = vpop.permute.xlu1 %1481 }
 0x8ea   :  { %v1485_v5 = vmul.f32 %v1482_v1, %v2821_v56 }
 0x8ec   :  { %v1487_v15 = vpack.c.bf16 %v1485_v5, %v1484_v40 }
 0x8ed   :  { %v1464_v16 = vpop.permute.xlu1 %1463 }
 0x8ee   :  { %2137 = vpush %v1464_v16 }
 0x8f1   :  { %v1577_v44 = vpop.permute.xlu1 %1576 }
 0x8f2   :  { %v1583_v34 = vmul.f32 %v1577_v44, %v2819_v13 }
 0x8f5   :  { %v1581_v18 = vpop.permute.xlu1 %1580 }
 0x8f6   :  { %v1584_v49 = vmul.f32 %v1581_v18, %v2821_v56 }
 0x8f8   :  { %v1586_v62 = vpack.c.bf16 %v1584_v49, %v1583_v34 }
 0x8fa   :  { %v1676_v48 = vpop.permute.xlu1 %1675 }
 0x8fb   :  { %v1682_v20 = vmul.f32 %v1676_v48, %v2819_v13 }
 0x8fe   :  { %v1680_v35 = vpop.permute.xlu1 %1679 }
 0x8ff   :  { %v1683_v47 = vmul.f32 %v1680_v35, %v2821_v56 }
 0x901   :  { %v1685_v14 = vpack.c.bf16 %v1683_v47, %v1682_v20 }
 0x902   :  { %v1563_v33 = vpop.permute.xlu1 %1562 }
 0x903   :  { %2139 = vpush %v1563_v33 }
 0x906   :  { %v1662_v58 = vpop.permute.xlu1 %1661 }
 0x907   :  { %2141 = vpush %v1662_v58 }
 0x91f   :  { %s2138_s28 = spop %2137 }
 0x920   :  { %v1466_v21 = vstv %s2138_s28 }
 0x934   :  { %s2880_s21 = spop %2139 }
 0x935   :  { %v1565_v23 = vstv %s2880_s21 }
 0x938   :  { %s2142_s22 = spop %2141 }
 0x9a5   :  { %v2072_v59 = vpop.f32.mrb[16].mxu1 }
 0x9a6   :  { %1452 = vperm.xlu0 %2197, %v2072_v59   ;;  %1365 = vperm.xlu1 %2196, %v2072_v59   ;;  %v1262_v4 = vpop.f32.mrb[17].mxu1 }
 0x9aa   :  { %2203 = vset.pattern.permute.xlu0 %v2390_v38  ;;  %2198 = vset.pattern.permute.xlu1 %v2391_v46 }
 0x9ab   :  { %1646 = vperm.xlu0 %2203, %v1262_v4   ;;  %1551 = vperm.xlu1 %2198, %v2072_v59  }
 0x9af   :  { %2204 = vset.pattern.permute.xlu0 %v2392_v37  ;;  %2199 = vset.pattern.permute.xlu1 %v2390_v38 }
 0x9b0   :  { %v2864_v7 = vpop.f32.mrb[20].mxu0  ;;  %1394 = vperm.xlu0 %2204, %v2814_v25   ;;  %1650 = vperm.xlu1 %2199, %v2072_v59  }
 0x9b1   :  { %v2077_v10 = vpop.f32.mrb[21].mxu0 }
 0x9b2   :  { %v2867_v17 = vpop.f32.mrb[22].mxu0 }
 0x9b3   :  { %v2078_v11 = vpop.f32.mrb[23].mxu0 }
 0x9b4   :  { %2200 = vset.pattern.permute.xlu1 %v2379_v9  ;;  %1489 = vrot.lane.b32.xlu0 %v1487_v15, %s2393_s24  ;;  %v1391_v9 = vpop.permute.xlu1 %1390 }
 0x9b5   :  { %1360 = vperm.xlu1 %2200, %v1262_v4   ;;  %2205 = vset.pattern.permute.xlu0 %v2381_v41  ;;  %v1397_v19 = vmul.f32 %v1391_v9, %v2819_v13 }
 0x9b8   :  { %1588 = vrot.lane.b32.xlu0 %v1586_v62, %s2394_s25 }
 0x9b9   :  { %2201 = vset.pattern.permute.xlu1 %v2389_v26 }
 0x9ba   :  { %1448 = vperm.xlu1 %2201, %v1262_v4  }
 0x9bc   :  { %1687 = vrot.lane.b32.xlu0 %v1685_v14, %s2395_s26 }
 0x9be   :  { %2202 = vset.pattern.permute.xlu1 %v2391_v46 }
 0x9bf   :  { %1547 = vperm.xlu1 %2202, %v1262_v4  }
 0x9e8   :  { %1271 = vxpose.xlu1.b32.start [1/2] (short) (narrow) %v1262_v4, 8  ;;  %v1664_v4 = vstv %s2142_s22 }
 0x9ec   :  { %1272 = vxpose.xlu1.b32.end [2/2] (short) (narrow) %v2072_v59, 8 }
 0xa25   :  { %v1453_v38 = vpop.permute.xlu0 %1452  ;;  %v1366_v26 = vpop.permute.xlu1 %1365 }
 0xa2a   :  { %v1647_v37 = vpop.permute.xlu0 %1646  ;;  %v1552_v46 = vpop.permute.xlu1 %1551 }
 0xa2f   :  { %v1395_v8 = vpop.permute.xlu0 %1394  ;;  %v1651_v52 = vpop.permute.xlu1 %1650 }
 0xa30   :  { %v1398_v41 = vmul.f32 %v1395_v8, %v2821_v56 }
 0xa32   :  { %v1400_v0 = vpack.c.bf16 %v1398_v41, %v1397_v19 }
 0xa33   :  { %v1490_v63 = vpop.permute.xlu0 %1489 }
 0xa34   :  { %2080 = vmatpush3.bf16.msra.mxu1 %v1400_v0  ;;  %2086 = vmatpush3.bf16.msra.mxu0 %v1490_v63  ;;  %v1361_v54 = vpop.permute.xlu1 %1360  ;;  %v1356_v0 = vmul.f32 %v2574_v27, %v2864_v7 }
 0xa35   :  { %2091 = vmatprep.subr.bf16.mxu1 %v2380_v31  ;;  %2097 = vmatprep.subr.bf16.mxu0 %v2380_v31 }
 0xa39   :  { %v1449_v61 = vpop.permute.xlu1 %1448 }
 0xa3e   :  { %v1548_v2 = vpop.permute.xlu1 %1547 }
 0xa68   :  { %v1287_v25 = vpop.trf.xlu1 }
 0xa69   :  { %v1371_v12 = vrot.slane %v1287_v25, %v2479_v22  ;;  %v1458_v36 = vrot.slane %v1287_v25, %v2522_v55  ;;  %v1557_v6 = vrot.slane %v1287_v25, %v2530_v60  ;;  %v1656_v28 = vrot.slane %v1287_v25, %v2517_v51 }
 0xa6b   :  { %v1372_v29 = vsub.f32 %v1361_v54, %v1371_v12  ;;  %v1373_v24 = vsub.f32 %v1366_v26, %v1371_v12  ;;  %v1459_v30 = vsub.f32 %v1449_v61, %v1458_v36  ;;  %v1460_v45 = vsub.f32 %v1453_v38, %v1458_v36  ;;  %v1589_v61 = vpop.permute.xlu0 %1588 }
 0xa6c   :  { %v1558_v1 = vsub.f32 %v1548_v2, %v1557_v6  ;;  %v1559_v16 = vsub.f32 %v1552_v46, %v1557_v6  ;;  %v1657_v44 = vsub.f32 %v1647_v37, %v1656_v28  ;;  %v1658_v18 = vsub.f32 %v1651_v52, %v1656_v28 }
 0xa6d   :  { %v1374_v34 = vmul.f32 %v2574_v27, %v1372_v29  ;;  %v1375_v49 = vmul.f32 %v2621_v3, %v1373_v24  ;;  %v1461_v62 = vmul.f32 %v2574_v27, %v1459_v30  ;;  %v1462_v51 = vmul.f32 %v2621_v3, %v1460_v45 }
 0xa6e   :  { %v1560_v48 = vmul.f32 %v2574_v27, %v1558_v1  ;;  %v1561_v35 = vmul.f32 %v2621_v3, %v1559_v16  ;;  %v1659_v20 = vmul.f32 %v2574_v27, %v1657_v44  ;;  %v1660_v47 = vmul.f32 %v2621_v3, %v1658_v18 }
 0xa6f   :  { %v1381_v14 = vmul.f32 %v1379_v57, %v1374_v34  ;;  %v1382_v33 = vmul.f32 %v1379_v57, %v1375_v49  ;;  %v1468_v58 = vmul.f32 %v1466_v21, %v1461_v62  ;;  %v1469_v59 = vmul.f32 %v1466_v21, %v1462_v51 }
 0xa70   :  { %v1567_v43 = vmul.f32 %v1565_v23, %v1560_v48  ;;  %v1568_v5 = vmul.f32 %v1565_v23, %v1561_v35  ;;  %v1666_v11 = vmul.f32 %v1664_v4, %v1659_v20  ;;  %v1667_v37 = vmul.f32 %v1664_v4, %v1660_v47 }
 0xa71   :  { %v1383_v40 = vmul.f32 1.442695, %v1381_v14  ;;  %v1385_v10 = vmul.f32 1.442695, %v1382_v33  ;;  %v1470_v15 = vmul.f32 1.442695, %v1468_v58  ;;  %v1357_v26 = vmul.f32 %v2621_v3, %v2867_v17  ;;  %v1688_v17 = vpop.permute.xlu0 %1687 }
 0xa72   :  { %v1472_v38 = vmul.f32 1.442695, %v1469_v59  ;;  %v1569_v9 = vmul.f32 1.442695, %v1567_v43  ;;  %v1571_v8 = vmul.f32 1.442695, %v1568_v5 }
 0xa73   :  { %2294 = vpow2.f32 %v1383_v40  ;;  %v1668_v19 = vmul.f32 1.442695, %v1666_v11  ;;  %v1670_v41 = vmul.f32 1.442695, %v1667_v37  ;;  %v1754_v4 = vsub.f32 0.0, %v2788_v32 }
 0xa74   :  { %2296 = vpow2.f32 %v1385_v10  ;;  %v1755_v5 = vsub.f32 0.0, %v2795_v39 }
 0xa75   :  { %2298 = vpow2.f32 %v1470_v15  ;;  %v1756_v43 = vmul.f32 1.442695, %v1754_v4 }
 0xa76   :  { %2300 = vpow2.f32 %v1472_v38  ;;  %v1758_v40 = vmul.f32 1.442695, %v1755_v5 }
 0xa77   :  { %2302 = vpow2.f32 %v1569_v9 }
 0xa78   :  { %2304 = vpow2.f32 %v1571_v8 }
 0xa79   :  { %2306 = vpow2.f32 %v1668_v19 }
 0xa7a   :  { %2308 = vpow2.f32 %v1670_v41  ;;  %v1749_v41 = vrot.slane %v2771_v42, %v2530_v60 }
 0xa7b   :  { %2310 = vpow2.f32 %v1756_v43 }
 0xa7c   :  { %2312 = vpow2.f32 %v1758_v40  ;;  %v1751_v60 = vmul.f32 %v1749_v41, %v2821_v56  ;;  %v2223_v56 = vld [vmem:[%s2979_s4 + $0x28] sm:$0xff]  }
 0xa7d   :  { %v2295_v63 = vpop.eup %2294 }
 0xa7e   :  { %v2297_v46 = vpop.eup %2296  ;;  %v1387_v52 = vmul.f32 %v2295_v63, %v1356_v0 }
 0xa7f   :  { %v2299_v54 = vpop.eup %2298  ;;  %v1388_v2 = vmul.f32 %v2297_v46, %v1357_v26 }
 0xa80   :  { %v2301_v25 = vpop.eup %2300  ;;  %v1474_v12 = vmul.f32 %v2299_v54, %v1356_v0 }
 0xa81   :  { %v2303_v36 = vpop.eup %2302  ;;  %v1399_v6 = vpack.c.bf16 %v1388_v2, %v1387_v52  ;;  %v1475_v28 = vmul.f32 %v2301_v25, %v1357_v26 }
 0xa82   :  { %v2305_v57 = vpop.eup %2304  ;;  %v1573_v21 = vmul.f32 %v2303_v36, %v1356_v0 }
 0xa83   :  { %v2307_v23 = vpop.eup %2306  ;;  %2082 = vmatmul.mubr.msk.bf16.vlgmr.msra.gmra.mrb[20].mxu1 %vm299_vm14, %v1399_v6  ;;  %v1486_v27 = vpack.c.bf16 %v1475_v28, %v1474_v12  ;;  %v1574_v7 = vmul.f32 %v2305_v57, %v1357_v26 }
 0xa84   :  { %v2309_v29 = vpop.eup %2308  ;;  %2092 = vmatpush3.bf16.msra.mxu1 %v1589_v61  ;;  %2093 = vmatprep.mubr.msk.bf16.mxu1 %vm2383_vm1, %v2380_v31  ;;  %v1672_v3 = vmul.f32 %v2307_v23, %v1356_v0 }
 0xa85   :  { %2088 = vmatmul.mubr.msk.bf16.vlgmr.msra.gmra.mrb[24].mxu0 %vm299_vm14, %v1486_v27  ;;  %v1585_v24 = vpack.c.bf16 %v1574_v7, %v1573_v21  ;;  %v1673_v30 = vmul.f32 %v2309_v29, %v1357_v26  ;;  %2103 = vmatprep.subr.bf16.mxu1 %v2380_v31  ;;  %v2311_v15 = vpop.eup %2310  ;;  %v1750_v26 = vmul.f32 %v1749_v41, %v2819_v13  ;;  %v2225_v27 = vld [vmem:[%s2979_s4 + $0x38] sm:$0xff]  }
 0xa86   :  { %2098 = vmatpush3.bf16.msra.mxu0 %v1688_v17  ;;  %2099 = vmatprep.mubr.msk.bf16.mxu0 %vm2383_vm1, %v2380_v31  ;;  %v1760_v11 = vadd.f32 1.0, %v2311_v15  ;;  %v2313_v9 = vpop.eup %2312 }
 0xa87   :  { %v1684_v45 = vpack.c.bf16 %v1673_v30, %v1672_v3  ;;  %v1761_v8 = vadd.f32 1.0, %v2313_v9 }
 0xa88   :  { %2314 = vrcp.f32 %v1760_v11 }
 0xa89   :  { %2316 = vrcp.f32 %v1761_v8 }
 0xa8b   :  { %2094 = vmatmul.mubr.msk.bf16.vlgmr.msra.gmra.mrb[24].mxu1 %vm299_vm14, %v1585_v24 }
 0xa8c   :  { %2111 = vmatprep.mubr.msk.bf16.mxu1 %vm2383_vm1, %v2380_v31 }
 0xa8d   :  { %2100 = vmatmul.mubr.msk.bf16.vlgmr.msra.gmra.mrb[28].mxu0 %vm299_vm14, %v1684_v45 }
 0xa92   :  { %v2315_v63 = vpop.eup %2314 }
 0xa93   :  { %v1766_v54 = vmul.f32 %v2315_v63, %v2788_v32  ;;  %v2317_v12 = vpop.eup %2316  ;;  %v2222_v32 = vld [vmem:[%s2979_s4 + $0x20] sm:$0xff]  }
 0xa94   :  { %v1767_v28 = vmul.f32 %v2317_v12, %v2795_v39  ;;  %2104 = vmatpush3.bf16.msra.mxu1 %v2222_v32  ;;  %v2224_v39 = vld [vmem:[%s2979_s4 + $0x30] sm:$0xff]  }
 0xa95   :  { %2105 = vmatprep.subr.bf16.mxu1 %v2380_v31 }
 0xa98   :  { %2106 = vmatpush3.bf16.msra.mxu1 %v2223_v56 }
 0xa99   :  { %2107 = vmatprep.subr.bf16.mxu1 %v2380_v31 }
 0xa9c   :  { %2108 = vmatpush3.bf16.msra.mxu1 %v2224_v39 }
 0xa9d   :  { %2109 = vmatprep.subr.bf16.mxu1 %v2380_v31 }
 0xaa0   :  { %2110 = vmatpush3.bf16.msra.mxu1 %v2225_v27 }
 0xb56   :  { %v1438_v1 = vpop.f32.mrb[20].mxu1 }
 0xb57   :  { %1445 = vst.msk [vmem:[#allocation2] sm:$0xff] %vm299_vm14, %v1438_v1  ;;  %v2083_v16 = vpop.f32.mrb[21].mxu1 }
 0xb58   :  { %v1529_v44 = vpop.f32.mrb[24].mxu0  ;;  %v1441_v18 = vpop.f32.mrb[22].mxu1  ;;  %v1789_v16 = vrot.slane %v2771_v42, %v2522_v55 }
 0xb59   :  { %1538 = vrot.lane.b32.xlu0 %v1529_v44, %s2396_s7  ;;  %v2089_v34 = vpop.f32.mrb[25].mxu0  ;;  %1446 = vst.msk [vmem:[#allocation2 + $0x8] sm:$0xff] %vm299_vm14, %v1441_v18  ;;  %v2084_v49 = vpop.f32.mrb[23].mxu1 }
 0xb5a   :  { %v1532_v62 = vpop.f32.mrb[26].mxu0 }
 0xb5b   :  { %v2090_v51 = vpop.f32.mrb[27].mxu0 }
 0xb5d   :  { %1540 = vrot.lane.b32.xlu0 %v1532_v62, %s2396_s7 }
 0xb5e   :  { %v1628_v48 = vpop.f32.mrb[24].mxu1 }
 0xb5f   :  { %v2095_v35 = vpop.f32.mrb[25].mxu1 }
 0xb60   :  { %v1727_v20 = vpop.f32.mrb[28].mxu0  ;;  %v1631_v47 = vpop.f32.mrb[26].mxu1 }
 0xb61   :  { %1637 = vrot.lane.b32.xlu0 %v1628_v48, %s2397_s8  ;;  %v2101_v14 = vpop.f32.mrb[29].mxu0  ;;  %v2096_v33 = vpop.f32.mrb[27].mxu1 }
 0xb62   :  { %v1730_v58 = vpop.f32.mrb[30].mxu0 }
 0xb63   :  { %v2102_v59 = vpop.f32.mrb[31].mxu0 }
 0xb65   :  { %1736 = vrot.lane.b32.xlu0 %v1727_v20, %s2384_s20 }
 0xb69   :  { %1639 = vrot.lane.b32.xlu0 %v1631_v47, %s2397_s8 }
 0xb6d   :  { %1738 = vrot.lane.b32.xlu0 %v1730_v58, %s2384_s20 }
 0xbcb   :  { %v1539_v10 = vpop.permute.xlu0 %1538 }
 0xbcc   :  { %1544 = vst.msk [vmem:[#allocation2] sm:$0xff] %vm654_vm3, %v1539_v10 }
 0xbcf   :  { %v1541_v38 = vpop.permute.xlu0 %1540 }
 0xbd0   :  { %1545 = vst.msk [vmem:[#allocation2 + $0x8] sm:$0xff] %vm654_vm3, %v1541_v38 }
 0xbd3   :  { %v1638_v37 = vpop.permute.xlu0 %1637 }
 0xbd4   :  { %1643 = vst.msk [vmem:[#allocation2] sm:$0xff] %vm754_vm5, %v1638_v37 }
 0xbd7   :  { %v1737_v19 = vpop.permute.xlu0 %1736 }
 0xbd8   :  { %1742 = vst.msk [vmem:[#allocation2] sm:$0xff] %vm854_vm6, %v1737_v19 }
 0xbdb   :  { %v1640_v0 = vpop.permute.xlu0 %1639 }
 0xbdc   :  { %1644 = vst.msk [vmem:[#allocation2 + $0x8] sm:$0xff] %vm754_vm5, %v1640_v0 }
 0xbdf   :  { %v1739_v46 = vpop.permute.xlu0 %1738  ;;  %v1744_v52 = vld [vmem:[#allocation2] sm:$0xff] }
 0xbe0   :  { %1743 = vst.msk [vmem:[#allocation2 + $0x8] sm:$0xff] %vm854_vm6, %v1739_v46  ;;  %v1752_v61 = vadd.f32 %v1750_v26, %v1744_v52 }
 0xbe2   :  { %v1768_v2 = vmul.f32 %v1766_v54, %v1752_v61 }
 0xbe4   :  { %v1770_v25 = vmul.f32 %v1768_v2, %v1768_v2 }
 0xbe6   :  { %v1772_v36 = vsel %vm885_vm7, %v1770_v25, 0.0 }
 0xbe7   :  { %1773 = vadd.xlane.f32.xlu0 %v1772_v36  ;;  %v1745_v6 = vld [vmem:[#allocation2 + $0x8] sm:$0xff] }
 0xbe8   :  { %v1753_v57 = vadd.f32 %v1751_v60, %v1745_v6 }
 0xbea   :  { %v1769_v13 = vmul.f32 %v1767_v28, %v1753_v57 }
 0xbec   :  { %v1771_v21 = vmul.f32 %v1769_v13, %v1769_v13 }
 0xbee   :  { %v1775_v23 = vsel %vm885_vm7, %v1771_v21, 0.0 }
 0xbef   :  { %1776 = vadd.xlane.f32.xlu1 %v1775_v23 }
 0xc74   :  { %v1774_v7 = vpop.xlane.xlu0 %1773 }
 0xc75   :  { %v1778_v29 = vmul.f32 0.015625, %v1774_v7 }
 0xc77   :  { %v1780_v3 = vadd.f32 1e-05, %v1778_v29 }
 0xc79   :  { %2318 = vrsqrt.f32 %v1780_v3 }
 0xc7c   :  { %v1777_v17 = vpop.xlane.xlu1 %1776 }
 0xc7d   :  { %v1779_v24 = vmul.f32 0.015625, %v1777_v17 }
 0xc7f   :  { %v1781_v30 = vadd.f32 1e-05, %v1779_v24 }
 0xc81   :  { %2320 = vrsqrt.f32 %v1781_v30 }
 0xc83   :  { %v2319_v45 = vpop.eup %2318 }
 0xc84   :  { %v1784_v1 = vmul.f32 %v2319_v45, %v1768_v2 }
 0xc86   :  { %v1790_v49 = vmul.f32 %v1789_v16, %v1784_v1 }
 0xc8b   :  { %v2321_v44 = vpop.eup %2320 }
 0xc8c   :  { %v1785_v18 = vmul.f32 %v2321_v44, %v1769_v13 }
 0xc8e   :  { %v1791_v34 = vmul.f32 %v1789_v16, %v1785_v18 }
 0xc90   :  { %v1792_v62 = vpack.c.bf16 %v1791_v34, %v1790_v49 }
 0xc92   :  { %2112 = vmatmul.mubr.msk.bf16.vlgmr.msra.gmra.mrb[28].mxu1 %vm885_vm7, %v1792_v62 }
 0xd65   :  { %v1865_v31 = vpop.f32.mrb[28].mxu1 }
 0xd66   :  { %v1866_v51 = vadd.f32 %v1865_v31, %v2743_v50  ;;  %v2113_v48 = vpop.f32.mrb[29].mxu1 }
 0xd67   :  { %v1868_v35 = vpop.f32.mrb[30].mxu1 }
 0xd68   :  { %v1869_v20 = vadd.f32 %v1868_v35, %v2748_v53  ;;  %v2114_v47 = vpop.f32.mrb[31].mxu1  ;;  %v1872_v14 = vmul.f32 %v1866_v51, %v1866_v51  ;;  %v1973_v53 = vld [vmem:[%s2978_s3 + $0x10] sm:$0xff]  ;;  %s2350_s3 = scalar_lea.vmem %s1908_s16, 256 }
 0xd69   :  { %v1891_v10 = vrot.slane %v1973_v53, %v2479_v22  ;;  %v1897_v38 = vrot.slane %v1973_v53, %v2522_v55  ;;  %p2351_p8 = scmp.ne.s32.totalorder %s1908_s16, %s2350_s3  ;;  %p2356_p10 = scmp.lt.s32.totalorder %s2350_s3, %s2350_s3 }
 0xd6a   :  { %v1874_v33 = vsel %vm90_vm0, %v1872_v14, 0.0  ;;  %v1873_v58 = vmul.f32 %v1869_v20, %v1869_v20 }
 0xd6b   :  { %1875 = vadd.xlane.f32.xlu0 %v1874_v33  ;;  %p2357_p11 = por %p2356_p10, %p2355_p9 }
 0xd6c   :  { %v1877_v42 = vsel %vm90_vm0, %v1873_v58, 0.0 }
 0xd6d   :  { %p2358_p12 = pnand %p2357_p11, %p2351_p8 }
 0xd6f   :  { %1878 = vadd.xlane.f32.xlu0 %v1877_v42 }
 0xdf8   :  { %v1876_v59 = vpop.xlane.xlu0 %1875 }
 0xdf9   :  { %v1880_v4 = vmul.f32 0.03125, %v1876_v59 }
 0xdfb   :  { %v1882_v43 = vadd.f32 1e-05, %v1880_v4 }
 0xdfc   :  { %v1879_v5 = vpop.xlane.xlu0 %1878 }
 0xdfd   :  { %2322 = vrsqrt.f32 %v1882_v43  ;;  %v1881_v40 = vmul.f32 0.03125, %v1879_v5 }
 0xdff   :  { %v1883_v50 = vadd.f32 1e-05, %v1881_v40 }
 0xe01   :  { %2324 = vrsqrt.f32 %v1883_v50 }
 0xe07   :  { %v2323_v15 = vpop.eup %2322 }
 0xe08   :  { %v1886_v11 = vmul.f32 %v2323_v15, %v1866_v51 }
 0xe0a   :  { %v1892_v37 = vmul.f32 %v1891_v10, %v1886_v11 }
 0xe0b   :  { %v2325_v9 = vpop.eup %2324 }
 0xe0c   :  { %v1887_v8 = vmul.f32 %v2325_v9, %v1869_v20  ;;  %v1898_v19 = vadd.f32 %v1897_v38, %v1892_v37 }
 0xe0e   :  { %v1893_v41 = vmul.f32 %v1891_v10, %v1887_v8  ;;  %1900 = vst.msk [vmem:[#allocation7] sm:$0xff] %vm90_vm0, %v1898_v19 }
 0xe10   :  { %v1899_v0 = vadd.f32 %v1897_v38, %v1893_v41 }
 0xe12   :  { %1901 = vst.msk [vmem:[#allocation7 + $0x8] sm:$0xff] %vm90_vm0, %v1899_v0 }
 0xe13   :  { %2361 = shalt.err (!%p2358_p12)
}
 0xe14   :  { %s2362_s19 = scalar_lea.hbm %s2980_s5, 256 }
 0xe15   :  { %p2363_p13 = scmp.ne.s32.totalorder %s2980_s5, %s2362_s19  ;;  %p2366_p0 = scmp.lt.u32.totalorder %s2362_s19, %s2980_s5 }
 0xe17   :  { %p2368_p1 = pnand %p2366_p0, %p2363_p13 }
 0xe19   :  { %2371 = shalt.err (!%p2368_p1)
}
 0xe1a   :  { %s2399_s6 = smov 128   ;;  %s2400_s9 = smov 8  }
 0xe1b   :  { %1913 = dma.vmem_to_hbm [thread:$0]  %s1908_s16, 256, %s2980_s5, [#allocation6], %s2399_s6, %s2399_s6, %s2400_s9  }
 0xe1c   :  { %2374 = dma.done.wait [#allocation6], 256  }
 0xe1d   :  { %2375 = vsyncadd [#allocation6], 4294967040 }
 0xe1e   :  { %1917 = vsyncpa [#allocation5], 1 }
 0xe1f   :  { %1918 = vsyncpa [#allocation6], 1 }

</bundles_post_ra>
